<compile_context>
chip_gen: v7x
topology: tpu7x:2x2x1
jax: 0.10.0
libtpu: 0.0.40
codegen_flags: <defaults>
</compile_context>

<pallas_src>
import functools

import jax
import jax.numpy as jnp
import numpy as np
from jax.experimental import pallas as pl
from jax.experimental.pallas import tpu as pltpu

LANE = 128
COMPUTE_DTYPE = jnp.bfloat16   # MXU input dtype (accumulation stays f32)


def _round_up(n, m):
    return (n + m - 1) // m * m


# ----------------------------- Pallas kernel --------------------------------

def wave_block_kernel(x_ref, w0_ref, b0_ref, wfg_ref, bfg_ref, wr_ref, br_ref,
                      o_ref, *, num_rates, kernel_size):
    # x_ref: (1, L, Cin_p) bf16      o_ref: (1, L, C_p) f32
    L = x_ref.shape[1]
    C = wr_ref.shape[-1]                       # padded channel count (mult of 128)

    x = x_ref[0]                               # (L, Cin_p) bf16
    # 1x1 input projection, f32 accumulation
    y = jnp.dot(x, w0_ref[...], preferred_element_type=jnp.float32) + b0_ref[...]
    res = y                                    # (L, C) f32

    for i in range(num_rates):                 # small static unroll (num_rates)
        d = 2 ** i
        pad = d * (kernel_size - 1) // 2

        # pad once per rate, take K static slices -> tap-folded (L, K*C) input
        if pad > 0:
            halo = jnp.zeros((pad, C), jnp.float32)
            y_pad = jnp.concatenate([halo, y, halo], axis=0)   # (L + 2*pad, C)
        else:
            y_pad = y
        if kernel_size > 1:
            taps = [y_pad[t * d: t * d + L, :] for t in range(kernel_size)]
            ys = jnp.concatenate(taps, axis=1)                 # (L, K*C)
        else:
            ys = y_pad

        # fused filter|gate matmul: (L, K*C) @ (K*C, 2*C), bias added once
        fg = jnp.dot(ys.astype(COMPUTE_DTYPE), wfg_ref[i],
                     preferred_element_type=jnp.float32) + bfg_ref[i]
        z = jnp.tanh(fg[:, :C]) * jax.nn.sigmoid(fg[:, C:])    # gated activation

        # 1x1 residual-branch projection (feeds the next rate, per PyTorch spec)
        y = jnp.dot(z.astype(COMPUTE_DTYPE), wr_ref[i],
                    preferred_element_type=jnp.float32) + br_ref[i]
        res = res + y

    o_ref[0] = res.astype(o_ref.dtype)


def wave_block_pallas(x_blc, kp, *, num_rates, kernel_size, out_channels):
    """x_blc: (B, L, Cin) channels-last f32. Returns (B, L, out_channels) f32."""
    B, L, Cin = x_blc.shape
    Cin_p = kp["w0"].shape[0]
    C_p = kp["wr"].shape[-1]

    # pad input channels to lane width and cast to the MXU input dtype
    xp = jnp.pad(x_blc, ((0, 0), (0, 0), (0, Cin_p - Cin))).astype(COMPUTE_DTYPE)

    kernel = functools.partial(wave_block_kernel,
                               num_rates=num_rates, kernel_size=kernel_size)

    def _rep(a):  # weight replicated across the batch grid (full-array block)
        z = (0,) * a.ndim
        return pl.BlockSpec(a.shape, lambda b, _z=z: _z)

    # advisory cost estimate for the XLA scheduler
    flops = 2 * B * L * Cin_p * C_p
    flops += num_rates * (2 * B * L * (kernel_size * C_p) * (2 * C_p)
                          + 2 * B * L * C_p * C_p)
    transcendentals = 2 * B * L * C_p * num_rates
    bytes_accessed = int(xp.size) * 2 + B * L * C_p * 4
    bytes_accessed += sum(int(a.size) * a.dtype.itemsize for a in kp.values())

    out = pl.pallas_call(
        kernel,
        out_shape=jax.ShapeDtypeStruct((B, L, C_p), jnp.float32),
        grid=(B,),
        in_specs=[
            pl.BlockSpec((1, L, Cin_p), lambda b: (b, 0, 0)),
            _rep(kp["w0"]), _rep(kp["b0"]),
            _rep(kp["wfg"]), _rep(kp["bfg"]),
            _rep(kp["wr"]), _rep(kp["br"]),
        ],
        out_specs=pl.BlockSpec((1, L, C_p), lambda b: (b, 0, 0)),
        compiler_params=pltpu.CompilerParams(dimension_semantics=("parallel",)),
        cost_estimate=pl.CostEstimate(flops=int(flops),
                                      transcendentals=int(transcendentals),
                                      bytes_accessed=int(bytes_accessed)),
    )(xp, kp["w0"], kp["b0"], kp["wfg"], kp["bfg"], kp["wr"], kp["br"])

    return out[:, :, :out_channels]   # strip lane padding


# -------------------- deterministic parameter construction ------------------

def init_wave_block_params(key, in_channels, out_channels, dilation_rates, kernel_size):
    """Weights in PyTorch Conv1d layout (O, I, K); deterministic normal init."""
    n_keys = 2 + 6 * dilation_rates
    keys = jax.random.split(key, n_keys)
    ki = iter(range(n_keys))

    def nrm(k, shape, scale=0.2):
        return scale * jax.random.normal(k, shape, dtype=jnp.float32)

    pt = {
        "conv0_w": nrm(keys[next(ki)], (out_channels, in_channels, 1)),
        "conv0_b": nrm(keys[next(ki)], (out_channels,)),
        "fw": [], "fb": [], "gw": [], "gb": [], "rw": [], "rb": [],
    }
    for _ in range(dilation_rates):
        pt["fw"].append(nrm(keys[next(ki)], (out_channels, out_channels, kernel_size)))
        pt["fb"].append(nrm(keys[next(ki)], (out_channels,)))
        pt["gw"].append(nrm(keys[next(ki)], (out_channels, out_channels, kernel_size)))
        pt["gb"].append(nrm(keys[next(ki)], (out_channels,)))
        pt["rw"].append(nrm(keys[next(ki)], (out_channels, out_channels, 1)))
        pt["rb"].append(nrm(keys[next(ki)], (out_channels,)))
    return pt


def to_kernel_params(pt, *, lane=LANE, compute_dtype=COMPUTE_DTYPE):
    """Transpose / fuse / zero-pad PyTorch-layout weights for the kernel.

    Filter & gate weights are concatenated along the output axis and the K taps
    are stacked along the contraction axis: wfg[i] is (K*C_p, 2*C_p).
    Zero padding of the extra lanes guarantees padded channels stay exactly 0.
    """
    Cout, Cin, _ = pt["conv0_w"].shape
    K = pt["fw"][0].shape[-1]
    R = len(pt["fw"])
    Cin_p, C_p = _round_up(Cin, lane), _round_up(Cout, lane)

    def pad2(a, rows, cols):
        return jnp.pad(a, ((0, rows - a.shape[0]), (0, cols - a.shape[1])))

    def pad1(v, n):
        return jnp.pad(v, (0, n - v.shape[0]))

    w0 = pad2(pt["conv0_w"][:, :, 0].T, Cin_p, C_p)              # (Cin_p, C_p)
    b0 = pad1(pt["conv0_b"], C_p)[None, :]                       # (1, C_p)

    wfg, bfg, wr, br = [], [], [], []
    for i in range(R):
        per_tap = []
        for t in range(K):
            f_t = pad2(pt["fw"][i][:, :, t].T, C_p, C_p)         # (C_p, C_p)
            g_t = pad2(pt["gw"][i][:, :, t].T, C_p, C_p)
            per_tap.append(jnp.concatenate([f_t, g_t], axis=1))  # (C_p, 2*C_p)
        wfg.append(jnp.concatenate(per_tap, axis=0))             # (K*C_p, 2*C_p)
        bfg.append(jnp.concatenate([pad1(pt["fb"][i], C_p),
                                    pad1(pt["gb"][i], C_p)])[None, :])
        wr.append(pad2(pt["rw"][i][:, :, 0].T, C_p, C_p))
        br.append(pad1(pt["rb"][i], C_p)[None, :])

    return {
        "w0": w0.astype(compute_dtype),
        "b0": b0.astype(jnp.float32),
        "wfg": jnp.stack(wfg).astype(compute_dtype),   # (R, K*C_p, 2*C_p)
        "bfg": jnp.stack(bfg).astype(jnp.float32),     # (R, 1, 2*C_p)
        "wr": jnp.stack(wr).astype(compute_dtype),     # (R, C_p, C_p)
        "br": jnp.stack(br).astype(jnp.float32),       # (R, 1, C_p)
    }


# --------------------------- pure-JAX reference ------------------------------

def _conv1d_ref(x_ncl, w, b, dilation=1, padding=0):
    out = jax.lax.conv_general_dilated(
        x_ncl, w, window_strides=(1,), padding=[(padding, padding)],
        rhs_dilation=(dilation,), dimension_numbers=("NCH", "OIH", "NCH"))
    return out + b[None, :, None]


def wave_block_ref(x_ncl, pt, *, num_rates, kernel_size):
    y = _conv1d_ref(x_ncl, pt["conv0_w"], pt["conv0_b"])
    res = y
    for i in range(num_rates):
        d = 2 ** i
        pad = int(d * (kernel_size - 1) / 2)
        f = _conv1d_ref(y, pt["fw"][i], pt["fb"][i], d, pad)
        g = _conv1d_ref(y, pt["gw"][i], pt["gb"][i], d, pad)
        y = jnp.tanh(f) * jax.nn.sigmoid(g)
        y = _conv1d_ref(y, pt["rw"][i], pt["rb"][i])
        res = res + y
    return res


# ----------------------------------- main ------------------------------------

if __name__ == "__main__":
    B, C_IN, C_OUT, L = 2, 8, 16, 64
    NUM_RATES, K = 3, 3

    key = jax.random.PRNGKey(0)
    k_x, k_p = jax.random.split(key)

    x_ncl = jax.random.normal(k_x, (B, C_IN, L), dtype=jnp.float32)   # PyTorch layout
    pt_params = init_wave_block_params(k_p, C_IN, C_OUT, NUM_RATES, K)
    kparams = to_kernel_params(pt_params)

    # kernel layout: channels last
    x_blc = jnp.transpose(x_ncl, (0, 2, 1))                           # (B, L, Cin)
    out_blc = wave_block_pallas(x_blc, kparams, num_rates=NUM_RATES,
                                kernel_size=K, out_channels=C_OUT)
    out_blc = jax.block_until_ready(out_blc)
    out_ncl = jnp.transpose(out_blc, (0, 2, 1))                       # (B, Cout, L)

    ref = wave_block_ref(x_ncl, pt_params, num_rates=NUM_RATES, kernel_size=K)

    # bf16 MXU inputs (f32 accumulation) -> bf16-appropriate tolerance
    np.testing.assert_allclose(np.asarray(out_ncl), np.asarray(ref),
                               rtol=3e-2, atol=3e-2)
    print("KERNEL_OK")
</pallas_src>

<mosaic_0001>
module attributes {stable_mosaic.version = 11 : i64} {
  func.func @wave_block_kernel(%arg0: i32, %arg1: memref<1x64x128xbf16, #tpu.memory_space<vmem>>, %arg2: memref<128x128xbf16, #tpu.memory_space<vmem>>, %arg3: memref<1x128xf32, #tpu.memory_space<vmem>>, %arg4: memref<3x384x256xbf16, #tpu.memory_space<vmem>>, %arg5: memref<3x1x256xf32, #tpu.memory_space<vmem>>, %arg6: memref<3x128x128xbf16, #tpu.memory_space<vmem>>, %arg7: memref<3x1x128xf32, #tpu.memory_space<vmem>>, %arg8: memref<1x64x128xf32, #tpu.memory_space<vmem>>) attributes {dimension_semantics = [#tpu.dimension_semantics<parallel>], iteration_bounds = array<i64: 2>, scalar_prefetch = 0 : i64, scratch_operands = 0 : i64, tpu.core_type = #tpu.core_type<tc>, window_params = [{transform_indices = @transform_0, window_bounds = array<i64: 1, 64, 128>}, {pipeline_mode = #tpu.pipeline_mode<synchronous>, transform_indices = @transform_1, window_bounds = array<i64: 128, 128>}, {pipeline_mode = #tpu.pipeline_mode<synchronous>, transform_indices = @transform_2, window_bounds = array<i64: 1, 128>}, {pipeline_mode = #tpu.pipeline_mode<synchronous>, transform_indices = @transform_3, window_bounds = array<i64: 3, 384, 256>}, {pipeline_mode = #tpu.pipeline_mode<synchronous>, transform_indices = @transform_4, window_bounds = array<i64: 3, 1, 256>}, {pipeline_mode = #tpu.pipeline_mode<synchronous>, transform_indices = @transform_5, window_bounds = array<i64: 3, 128, 128>}, {pipeline_mode = #tpu.pipeline_mode<synchronous>, transform_indices = @transform_6, window_bounds = array<i64: 3, 1, 128>}, {transform_indices = @transform_7, window_bounds = array<i64: 1, 64, 128>}]} {
    %c0 = arith.constant 0 : index
    %c0_0 = arith.constant 0 : index
    %c0_1 = arith.constant 0 : index
    %0 = vector.load %arg1[%c0, %c0_0, %c0_1] : memref<1x64x128xbf16, #tpu.memory_space<vmem>>, vector<1x64x128xbf16>
    %1 = vector.shape_cast %0 : vector<1x64x128xbf16> to vector<64x128xbf16>
    %c0_2 = arith.constant 0 : index
    %c0_3 = arith.constant 0 : index
    %2 = vector.load %arg2[%c0_2, %c0_3] : memref<128x128xbf16, #tpu.memory_space<vmem>>, vector<128x128xbf16>
    %cst = arith.constant dense<0.000000e+00> : vector<64x128xf32>
    %3 = tpu.matmul %1, %2, %cst {dimension_numbers = #tpu.dot_dimension_numbers<[1], [0], [0], [1], [0, 0, 1, 1], [], []>} : vector<64x128xbf16>, vector<128x128xbf16>, vector<64x128xf32> -> vector<64x128xf32>
    %c0_4 = arith.constant 0 : index
    %c0_5 = arith.constant 0 : index
    %4 = vector.load %arg3[%c0_4, %c0_5] : memref<1x128xf32, #tpu.memory_space<vmem>>, vector<1x128xf32>
    %5 = vector.broadcast %4 : vector<1x128xf32> to vector<64x128xf32>
    %6 = arith.addf %3, %5 : vector<64x128xf32>
    %cst_6 = arith.constant 0.000000e+00 : f32
    %7 = vector.broadcast %cst_6 : f32 to vector<1x128xf32>
    %8 = tpu.concatenate %7, %6, %7 in 0 : vector<1x128xf32>, vector<64x128xf32>, vector<1x128xf32> -> vector<66x128xf32>
    %9 = vector.extract_strided_slice %8 {offsets = [0, 0], sizes = [64, 128], strides = [1, 1]} : vector<66x128xf32> to vector<64x128xf32>
    %10 = vector.extract_strided_slice %8 {offsets = [1, 0], sizes = [64, 128], strides = [1, 1]} : vector<66x128xf32> to vector<64x128xf32>
    %11 = vector.extract_strided_slice %8 {offsets = [2, 0], sizes = [64, 128], strides = [1, 1]} : vector<66x128xf32> to vector<64x128xf32>
    %12 = tpu.concatenate %9, %10, %11 in 1 : vector<64x128xf32>, vector<64x128xf32>, vector<64x128xf32> -> vector<64x384xf32>
    %13 = arith.truncf %12 : vector<64x384xf32> to vector<64x384xbf16>
    %c0_7 = arith.constant 0 : index
    %c0_8 = arith.constant 0 : index
    %c0_9 = arith.constant 0 : index
    %14 = vector.load %arg4[%c0_7, %c0_8, %c0_9] : memref<3x384x256xbf16, #tpu.memory_space<vmem>>, vector<1x384x256xbf16>
    %15 = vector.shape_cast %14 : vector<1x384x256xbf16> to vector<384x256xbf16>
    %cst_10 = arith.constant dense<0.000000e+00> : vector<64x256xf32>
    %16 = tpu.matmul %13, %15, %cst_10 {dimension_numbers = #tpu.dot_dimension_numbers<[1], [0], [0], [1], [0, 0, 1, 1], [], []>} : vector<64x384xbf16>, vector<384x256xbf16>, vector<64x256xf32> -> vector<64x256xf32>
    %c0_11 = arith.constant 0 : index
    %c0_12 = arith.constant 0 : index
    %c0_13 = arith.constant 0 : index
    %17 = vector.load %arg5[%c0_11, %c0_12, %c0_13] : memref<3x1x256xf32, #tpu.memory_space<vmem>>, vector<1x1x256xf32>
    %18 = vector.shape_cast %17 : vector<1x1x256xf32> to vector<1x256xf32>
    %19 = vector.broadcast %18 : vector<1x256xf32> to vector<64x256xf32>
    %20 = arith.addf %16, %19 : vector<64x256xf32>
    %21 = vector.extract_strided_slice %20 {offsets = [0, 0], sizes = [64, 128], strides = [1, 1]} : vector<64x256xf32> to vector<64x128xf32>
    %22 = math.tanh %21 : vector<64x128xf32>
    %23 = vector.extract_strided_slice %20 {offsets = [0, 128], sizes = [64, 128], strides = [1, 1]} : vector<64x256xf32> to vector<64x128xf32>
    %24 = arith.negf %23 : vector<64x128xf32>
    %25 = math.exp %24 : vector<64x128xf32>
    %cst_14 = arith.constant 1.000000e+00 : f32
    %26 = vector.broadcast %cst_14 : f32 to vector<64x128xf32>
    %27 = arith.addf %26, %25 : vector<64x128xf32>
    %28 = arith.divf %26, %27 : vector<64x128xf32>
    %29 = arith.mulf %22, %28 : vector<64x128xf32>
    %30 = arith.truncf %29 : vector<64x128xf32> to vector<64x128xbf16>
    %c0_15 = arith.constant 0 : index
    %c0_16 = arith.constant 0 : index
    %c0_17 = arith.constant 0 : index
    %31 = vector.load %arg6[%c0_15, %c0_16, %c0_17] : memref<3x128x128xbf16, #tpu.memory_space<vmem>>, vector<1x128x128xbf16>
    %32 = vector.shape_cast %31 : vector<1x128x128xbf16> to vector<128x128xbf16>
    %cst_18 = arith.constant dense<0.000000e+00> : vector<64x128xf32>
    %33 = tpu.matmul %30, %32, %cst_18 {dimension_numbers = #tpu.dot_dimension_numbers<[1], [0], [0], [1], [0, 0, 1, 1], [], []>} : vector<64x128xbf16>, vector<128x128xbf16>, vector<64x128xf32> -> vector<64x128xf32>
    %c0_19 = arith.constant 0 : index
    %c0_20 = arith.constant 0 : index
    %c0_21 = arith.constant 0 : index
    %34 = vector.load %arg7[%c0_19, %c0_20, %c0_21] : memref<3x1x128xf32, #tpu.memory_space<vmem>>, vector<1x1x128xf32>
    %35 = vector.shape_cast %34 : vector<1x1x128xf32> to vector<1x128xf32>
    %36 = vector.broadcast %35 : vector<1x128xf32> to vector<64x128xf32>
    %37 = arith.addf %33, %36 : vector<64x128xf32>
    %38 = arith.addf %6, %37 : vector<64x128xf32>
    %cst_22 = arith.constant 0.000000e+00 : f32
    %39 = vector.broadcast %cst_22 : f32 to vector<2x128xf32>
    %40 = tpu.concatenate %39, %37, %39 in 0 : vector<2x128xf32>, vector<64x128xf32>, vector<2x128xf32> -> vector<68x128xf32>
    %41 = vector.extract_strided_slice %40 {offsets = [0, 0], sizes = [64, 128], strides = [1, 1]} : vector<68x128xf32> to vector<64x128xf32>
    %42 = vector.extract_strided_slice %40 {offsets = [2, 0], sizes = [64, 128], strides = [1, 1]} : vector<68x128xf32> to vector<64x128xf32>
    %43 = vector.extract_strided_slice %40 {offsets = [4, 0], sizes = [64, 128], strides = [1, 1]} : vector<68x128xf32> to vector<64x128xf32>
    %44 = tpu.concatenate %41, %42, %43 in 1 : vector<64x128xf32>, vector<64x128xf32>, vector<64x128xf32> -> vector<64x384xf32>
    %45 = arith.truncf %44 : vector<64x384xf32> to vector<64x384xbf16>
    %c1 = arith.constant 1 : index
    %c0_23 = arith.constant 0 : index
    %c0_24 = arith.constant 0 : index
    %46 = vector.load %arg4[%c1, %c0_23, %c0_24] : memref<3x384x256xbf16, #tpu.memory_space<vmem>>, vector<1x384x256xbf16>
    %47 = vector.shape_cast %46 : vector<1x384x256xbf16> to vector<384x256xbf16>
    %cst_25 = arith.constant dense<0.000000e+00> : vector<64x256xf32>
    %48 = tpu.matmul %45, %47, %cst_25 {dimension_numbers = #tpu.dot_dimension_numbers<[1], [0], [0], [1], [0, 0, 1, 1], [], []>} : vector<64x384xbf16>, vector<384x256xbf16>, vector<64x256xf32> -> vector<64x256xf32>
    %c1_26 = arith.constant 1 : index
    %c0_27 = arith.constant 0 : index
    %c0_28 = arith.constant 0 : index
    %49 = vector.load %arg5[%c1_26, %c0_27, %c0_28] : memref<3x1x256xf32, #tpu.memory_space<vmem>>, vector<1x1x256xf32>
    %50 = vector.shape_cast %49 : vector<1x1x256xf32> to vector<1x256xf32>
    %51 = vector.broadcast %50 : vector<1x256xf32> to vector<64x256xf32>
    %52 = arith.addf %48, %51 : vector<64x256xf32>
    %53 = vector.extract_strided_slice %52 {offsets = [0, 0], sizes = [64, 128], strides = [1, 1]} : vector<64x256xf32> to vector<64x128xf32>
    %54 = math.tanh %53 : vector<64x128xf32>
    %55 = vector.extract_strided_slice %52 {offsets = [0, 128], sizes = [64, 128], strides = [1, 1]} : vector<64x256xf32> to vector<64x128xf32>
    %56 = arith.negf %55 : vector<64x128xf32>
    %57 = math.exp %56 : vector<64x128xf32>
    %cst_29 = arith.constant 1.000000e+00 : f32
    %58 = vector.broadcast %cst_29 : f32 to vector<64x128xf32>
    %59 = arith.addf %58, %57 : vector<64x128xf32>
    %60 = arith.divf %58, %59 : vector<64x128xf32>
    %61 = arith.mulf %54, %60 : vector<64x128xf32>
    %62 = arith.truncf %61 : vector<64x128xf32> to vector<64x128xbf16>
    %c1_30 = arith.constant 1 : index
    %c0_31 = arith.constant 0 : index
    %c0_32 = arith.constant 0 : index
    %63 = vector.load %arg6[%c1_30, %c0_31, %c0_32] : memref<3x128x128xbf16, #tpu.memory_space<vmem>>, vector<1x128x128xbf16>
    %64 = vector.shape_cast %63 : vector<1x128x128xbf16> to vector<128x128xbf16>
    %cst_33 = arith.constant dense<0.000000e+00> : vector<64x128xf32>
    %65 = tpu.matmul %62, %64, %cst_33 {dimension_numbers = #tpu.dot_dimension_numbers<[1], [0], [0], [1], [0, 0, 1, 1], [], []>} : vector<64x128xbf16>, vector<128x128xbf16>, vector<64x128xf32> -> vector<64x128xf32>
    %c1_34 = arith.constant 1 : index
    %c0_35 = arith.constant 0 : index
    %c0_36 = arith.constant 0 : index
    %66 = vector.load %arg7[%c1_34, %c0_35, %c0_36] : memref<3x1x128xf32, #tpu.memory_space<vmem>>, vector<1x1x128xf32>
    %67 = vector.shape_cast %66 : vector<1x1x128xf32> to vector<1x128xf32>
    %68 = vector.broadcast %67 : vector<1x128xf32> to vector<64x128xf32>
    %69 = arith.addf %65, %68 : vector<64x128xf32>
    %70 = arith.addf %38, %69 : vector<64x128xf32>
    %cst_37 = arith.constant 0.000000e+00 : f32
    %71 = vector.broadcast %cst_37 : f32 to vector<4x128xf32>
    %72 = tpu.concatenate %71, %69, %71 in 0 : vector<4x128xf32>, vector<64x128xf32>, vector<4x128xf32> -> vector<72x128xf32>
    %73 = vector.extract_strided_slice %72 {offsets = [0, 0], sizes = [64, 128], strides = [1, 1]} : vector<72x128xf32> to vector<64x128xf32>
    %74 = vector.extract_strided_slice %72 {offsets = [4, 0], sizes = [64, 128], strides = [1, 1]} : vector<72x128xf32> to vector<64x128xf32>
    %75 = vector.extract_strided_slice %72 {offsets = [8, 0], sizes = [64, 128], strides = [1, 1]} : vector<72x128xf32> to vector<64x128xf32>
    %76 = tpu.concatenate %73, %74, %75 in 1 : vector<64x128xf32>, vector<64x128xf32>, vector<64x128xf32> -> vector<64x384xf32>
    %77 = arith.truncf %76 : vector<64x384xf32> to vector<64x384xbf16>
    %c2 = arith.constant 2 : index
    %c0_38 = arith.constant 0 : index
    %c0_39 = arith.constant 0 : index
    %78 = vector.load %arg4[%c2, %c0_38, %c0_39] : memref<3x384x256xbf16, #tpu.memory_space<vmem>>, vector<1x384x256xbf16>
    %79 = vector.shape_cast %78 : vector<1x384x256xbf16> to vector<384x256xbf16>
    %cst_40 = arith.constant dense<0.000000e+00> : vector<64x256xf32>
    %80 = tpu.matmul %77, %79, %cst_40 {dimension_numbers = #tpu.dot_dimension_numbers<[1], [0], [0], [1], [0, 0, 1, 1], [], []>} : vector<64x384xbf16>, vector<384x256xbf16>, vector<64x256xf32> -> vector<64x256xf32>
    %c2_41 = arith.constant 2 : index
    %c0_42 = arith.constant 0 : index
    %c0_43 = arith.constant 0 : index
    %81 = vector.load %arg5[%c2_41, %c0_42, %c0_43] : memref<3x1x256xf32, #tpu.memory_space<vmem>>, vector<1x1x256xf32>
    %82 = vector.shape_cast %81 : vector<1x1x256xf32> to vector<1x256xf32>
    %83 = vector.broadcast %82 : vector<1x256xf32> to vector<64x256xf32>
    %84 = arith.addf %80, %83 : vector<64x256xf32>
    %85 = vector.extract_strided_slice %84 {offsets = [0, 0], sizes = [64, 128], strides = [1, 1]} : vector<64x256xf32> to vector<64x128xf32>
    %86 = math.tanh %85 : vector<64x128xf32>
    %87 = vector.extract_strided_slice %84 {offsets = [0, 128], sizes = [64, 128], strides = [1, 1]} : vector<64x256xf32> to vector<64x128xf32>
    %88 = arith.negf %87 : vector<64x128xf32>
    %89 = math.exp %88 : vector<64x128xf32>
    %cst_44 = arith.constant 1.000000e+00 : f32
    %90 = vector.broadcast %cst_44 : f32 to vector<64x128xf32>
    %91 = arith.addf %90, %89 : vector<64x128xf32>
    %92 = arith.divf %90, %91 : vector<64x128xf32>
    %93 = arith.mulf %86, %92 : vector<64x128xf32>
    %94 = arith.truncf %93 : vector<64x128xf32> to vector<64x128xbf16>
    %c2_45 = arith.constant 2 : index
    %c0_46 = arith.constant 0 : index
    %c0_47 = arith.constant 0 : index
    %95 = vector.load %arg6[%c2_45, %c0_46, %c0_47] : memref<3x128x128xbf16, #tpu.memory_space<vmem>>, vector<1x128x128xbf16>
    %96 = vector.shape_cast %95 : vector<1x128x128xbf16> to vector<128x128xbf16>
    %cst_48 = arith.constant dense<0.000000e+00> : vector<64x128xf32>
    %97 = tpu.matmul %94, %96, %cst_48 {dimension_numbers = #tpu.dot_dimension_numbers<[1], [0], [0], [1], [0, 0, 1, 1], [], []>} : vector<64x128xbf16>, vector<128x128xbf16>, vector<64x128xf32> -> vector<64x128xf32>
    %c2_49 = arith.constant 2 : index
    %c0_50 = arith.constant 0 : index
    %c0_51 = arith.constant 0 : index
    %98 = vector.load %arg7[%c2_49, %c0_50, %c0_51] : memref<3x1x128xf32, #tpu.memory_space<vmem>>, vector<1x1x128xf32>
    %99 = vector.shape_cast %98 : vector<1x1x128xf32> to vector<1x128xf32>
    %100 = vector.broadcast %99 : vector<1x128xf32> to vector<64x128xf32>
    %101 = arith.addf %97, %100 : vector<64x128xf32>
    %102 = arith.addf %70, %101 : vector<64x128xf32>
    %c0_52 = arith.constant 0 : index
    %c0_53 = arith.constant 0 : index
    %c0_54 = arith.constant 0 : index
    %103 = vector.load %arg8[%c0_52, %c0_53, %c0_54] : memref<1x64x128xf32, #tpu.memory_space<vmem>>, vector<1x64x128xf32>
    %104 = vector.shape_cast %103 : vector<1x64x128xf32> to vector<64x128xf32>
    %105 = vector.shape_cast %102 : vector<64x128xf32> to vector<1x64x128xf32>
    tpu.vector_store %arg8[%c0_52, %c0_53, %c0_54], %105 {strides = array<i32>} : memref<1x64x128xf32, #tpu.memory_space<vmem>>, vector<1x64x128xf32>,
    return
  }
  func.func @transform_0(%arg0: i32) -> (i32, i32, i32) {
    %c0_i32 = arith.constant 0 : i32
    %c0_i32_0 = arith.constant 0 : i32
    %c0_i32_1 = arith.constant 0 : i32
    return %arg0, %c0_i32, %c0_i32_0 : i32, i32, i32
  }
  func.func @transform_1(%arg0: i32) -> (i32, i32) {
    %c0_i32 = arith.constant 0 : i32
    %c0_i32_0 = arith.constant 0 : i32
    %c0_i32_1 = arith.constant 0 : i32
    return %c0_i32, %c0_i32_0 : i32, i32
  }
  func.func @transform_2(%arg0: i32) -> (i32, i32) {
    %c0_i32 = arith.constant 0 : i32
    %c0_i32_0 = arith.constant 0 : i32
    %c0_i32_1 = arith.constant 0 : i32
    return %c0_i32, %c0_i32_0 : i32, i32
  }
  func.func @transform_3(%arg0: i32) -> (i32, i32, i32) {
    %c0_i32 = arith.constant 0 : i32
    %c0_i32_0 = arith.constant 0 : i32
    %c0_i32_1 = arith.constant 0 : i32
    %c0_i32_2 = arith.constant 0 : i32
    return %c0_i32, %c0_i32_0, %c0_i32_1 : i32, i32, i32
  }
  func.func @transform_4(%arg0: i32) -> (i32, i32, i32) {
    %c0_i32 = arith.constant 0 : i32
    %c0_i32_0 = arith.constant 0 : i32
    %c0_i32_1 = arith.constant 0 : i32
    %c0_i32_2 = arith.constant 0 : i32
    return %c0_i32, %c0_i32_0, %c0_i32_1 : i32, i32, i32
  }
  func.func @transform_5(%arg0: i32) -> (i32, i32, i32) {
    %c0_i32 = arith.constant 0 : i32
    %c0_i32_0 = arith.constant 0 : i32
    %c0_i32_1 = arith.constant 0 : i32
    %c0_i32_2 = arith.constant 0 : i32
    return %c0_i32, %c0_i32_0, %c0_i32_1 : i32, i32, i32
  }
  func.func @transform_6(%arg0: i32) -> (i32, i32, i32) {
    %c0_i32 = arith.constant 0 : i32
    %c0_i32_0 = arith.constant 0 : i32
    %c0_i32_1 = arith.constant 0 : i32
    %c0_i32_2 = arith.constant 0 : i32
    return %c0_i32, %c0_i32_0, %c0_i32_1 : i32, i32, i32
  }
  func.func @transform_7(%arg0: i32) -> (i32, i32, i32) {
    %c0_i32 = arith.constant 0 : i32
    %c0_i32_0 = arith.constant 0 : i32
    %c0_i32_1 = arith.constant 0 : i32
    return %arg0, %c0_i32, %c0_i32_0 : i32, i32, i32
  }
}

</mosaic_0001>

<bundles_post_ra>
// kernel: tpu_custom_call.1
= control target key start
LH: loop header
LB: loop body
LE: loop exit
PB: predicated region body
PF: predicated region fallthrough
CT: control target
= control target key end

     0   :  { %s4688_s0 = inlined_call_operand.hbm [shape: bf16[2,64,128], index: 0, kind: input, shape index: {}]   ;;  %s4689_s1 = inlined_call_operand.hbm [shape: bf16[128,128], index: 1, kind: input, shape index: {}]   ;;  %s4690_s2 = inlined_call_operand.vmem [shape: f32[1,128], index: 2, kind: input, shape index: {}]   ;;  %s4691_s3 = inlined_call_operand.hbm [shape: bf16[3,384,256], index: 3, kind: input, shape index: {}]   ;;  %s4692_s4 = inlined_call_operand.vmem [shape: f32[3,1,256], index: 4, kind: input, shape index: {}]   ;;  %s4693_s5 = inlined_call_operand.hbm [shape: bf16[3,128,128], index: 5, kind: input, shape index: {}]   ;;  %s4694_s6 = inlined_call_operand.vmem [shape: f32[3,1,128], index: 6, kind: input, shape index: {}]   ;;  %s4695_s7 = inlined_call_operand.hbm [shape: f32[2,64,128], index: 7, kind: output, shape index: {}]  }
   0x1   :  { %4704 = sst [smem:[#allocation16_spill]] %s4689_s1 }
   0x2   :  { %12 = vsyncpa [#allocation3], 0 }
   0x3   :  { %14 = vsyncpa [#allocation3 + $0x1], 0 }
   0x4   :  { %15 = vsyncpa [#allocation6], 0 }
   0x5   :  { %16 = vsyncpa [#allocation9], 0 }
   0x6   :  { %17 = vsyncpa [#allocation4], 0 }
   0x7   :  { %19 = vsyncpa [#allocation4 + $0x1], 0  ;;  %s4119_s24 = smov 0   ;;  %s4121_s25 = smov 0  }
   0x8   :  { %s4123_s26 = smov 0   ;;  %s4125_s27 = smov 0  }
   0x9 LB: > { %s4140_s28 = sadd.s32 4294967295, %s4064_s27   ;;  %s2890_s29 = sadd.s32 4294967294, %s4064_s27   ;;  %s4064_s27 = sphi %s4125_s27, %s4729_s27   ;;  %s4060_s26 = sphi %s4123_s26, %s4728_s26   ;;  %s4056_s25 = sphi %s4121_s25, %s4727_s25   ;;  %s4052_s24 = sphi %s4119_s24, %s4726_s24  }
   0xa   : > { %p45_p0 = scmp.ne.s32.totalorder %s4056_s25, %s4052_s24  ;;  %p4696_p1 = scmp.eq.s32.totalorder %s4140_s28, 0 }
   0xb   : > { %p201_p3 = scmp.eq.s32.totalorder %s2890_s29, 1  ;;  %p2891_p5 = scmp.ge.s32.totalorder %s4064_s27, 1 }
   0xc   : > { %p4149_p4 = por %p4696_p1, %p45_p0  ;;  %p208_p7 = scmp.lt.s32.totalorder %s4064_s27, 3 }
   0xd   : > { %p4154_p6 = por %p201_p3, %p45_p0  ;;  %s4066_s10 = smov [#allocation5]  }
   0xe   : > { %s4705_s30 = scalar_select %p4149_p4, 1, 0 }
   0xf   : > { %s4706_s8 = scalar_select %p4154_p6, 1, 0 }
  0x10   : > { %p4159_p8 = pnand %p2891_p5, %p208_p7  ;;  %s220_s11 = sshll.u32 %s4066_s10, 4  ;;  %s4163_s11 = int_to_ptr.vmem [resolvable:$true] %s220_s11 }
  0x11   : > { %4707 = sst [smem:[#allocation15_spill]] %s4706_s8  ;;  %s4067_s13 = smov [#allocation7]  }
  0x12   : > { %s4708_s9 = scalar_select %p4159_p8, 1, 0 }
  0x13   : > { %p3411_p9 = pneg %p4159_p8  ;;  %s236_s14 = sshll.u32 %s4067_s13, 4  ;;  %s4174_s14 = int_to_ptr.vmem [resolvable:$true] %s236_s14 }
  0x14   : > { %s4710_s1 = sld [smem:[#allocation16_spill]] }
  0x15   : > { %p4170_p11 = pnand %p3411_p9, %p4696_p1 }
  0x17   : > { %p4184_p13 = pneg %p4170_p11 }
  0x1a   : > { %s3876_s17 = scalar_lea.hbm %s4710_s1, 1024 }
  0x1b   : > { %p3877_p12 = scmp.ne.s32.totalorder %s4710_s1, %s3876_s17  ;;  %p3883_p5 = scmp.lt.u32.totalorder %s3876_s17, %s4710_s1 }
  0x1d   : > { %p3879_p0 = pnand %p4184_p13, %p3877_p12 }
  0x1f   : > { %p3880_p3 = pneg %p3879_p0 }
  0x21   : > { %p3885_p7 = pnand %p3883_p5, %p3880_p3 }
  0x23   : > { %3888 = shalt.err (!%p3885_p7)
}
  0x24   : > { %s3889_s23 = scalar_lea.vmem %s4163_s11, 1024  ;;  %p3897_p2 = scmp.lt.s32.totalorder %s4163_s11, %s4163_s11 }
  0x25   : > { %p3890_p9 = scmp.ne.s32.totalorder %s4163_s11, %s3889_s23  ;;  %p3898_p6 = scmp.lt.s32.totalorder %s3889_s23, %s3889_s23 }
  0x27   : > { %p3892_p10 = pnand %p3890_p9, %p4184_p13  ;;  %p3899_p12 = por %p3898_p6, %p3897_p2 }
  0x29   : > { %p3893_p1 = pneg %p3892_p10 }
  0x2b   : > { %p3900_p0 = pnand %p3899_p12, %p3893_p1 }
  0x2d   : > { %3903 = shalt.err (!%p3900_p0)
}
  0x2e   : > { %s4697_s29 = smov 64   ;;  %s4699_s10 = smov 4  }
  0x2f   : > { %3414 = dma.hbm_to_vmem [thread:$0]  (!%p4170_p11), %s4710_s1, 1024, %s4163_s11, [#allocation6], %s4697_s29, %s4697_s29, %s4699_s10  }
  0x30   : > { %s3904_s18 = scalar_lea.hbm %s4691_s3, 18432 }
  0x31   : > { %p3905_p1 = scmp.ne.s32.totalorder %s4691_s3, %s3904_s18  ;;  %p3911_p10 = scmp.lt.u32.totalorder %s3904_s18, %s4691_s3 }
  0x33   : > { %p3907_p2 = pnand %p3905_p1, %p4184_p13 }
  0x35   : > { %p3908_p6 = pneg %p3907_p2 }
  0x37   : > { %p3913_p3 = pnand %p3911_p10, %p3908_p6 }
  0x39   : > { %3916 = shalt.err (!%p3913_p3)
}
  0x3a   : > { %s3917_s11 = scalar_lea.vmem %s4174_s14, 18432  ;;  %p3925_p12 = scmp.lt.s32.totalorder %s4174_s14, %s4174_s14 }
  0x3b   : > { %p3918_p5 = scmp.ne.s32.totalorder %s4174_s14, %s3917_s11  ;;  %p3926_p0 = scmp.lt.s32.totalorder %s3917_s11, %s3917_s11 }
  0x3d   : > { %p3920_p7 = pnand %p3918_p5, %p4184_p13  ;;  %p3927_p1 = por %p3926_p0, %p3925_p12 }
  0x3f   : > { %p3921_p9 = pneg %p3920_p7 }
  0x41   : > { %p3928_p2 = pnand %p3927_p1, %p3921_p9 }
  0x43   : > { %3931 = shalt.err (!%p3928_p2)
}
  0x44   : > { %s4070_s13 = smov 128   ;;  %s4071_s15 = smov 8  }
  0x45   : > { %3417 = dma.hbm_to_vmem [thread:$0]  (!%p4170_p11), %s4691_s3, 18432, %s4174_s14, [#allocation6], %s4070_s13, %s4070_s13, %s4071_s15  }
  0x46   : > { %s4072_s18 = smov [#allocation8]   ;;  %s4232_s21 = sadd.s32 1, %s4064_s27  }
  0x47   : > { %s252_s19 = sshll.u32 %s4072_s18, 4  ;;  %s3932_s11 = scalar_lea.hbm %s4693_s5, 3072  ;;  %s253_s19 = int_to_ptr.vmem [resolvable:$true] %s252_s19 }
  0x48   : > { %p3933_p6 = scmp.ne.s32.totalorder %s4693_s5, %s3932_s11  ;;  %p3939_p5 = scmp.lt.u32.totalorder %s3932_s11, %s4693_s5 }
  0x4a   : > { %p3935_p10 = pnand %p3933_p6, %p4184_p13 }
  0x4c   : > { %p3936_p3 = pneg %p3935_p10 }
  0x4e   : > { %p3941_p7 = pnand %p3939_p5, %p3936_p3 }
  0x50   : > { %3944 = shalt.err (!%p3941_p7)
}
  0x51   : > { %s3945_s14 = scalar_lea.vmem %s253_s19, 3072  ;;  %p3953_p1 = scmp.lt.s32.totalorder %s253_s19, %s253_s19 }
  0x52   : > { %p3946_p9 = scmp.ne.s32.totalorder %s253_s19, %s3945_s14  ;;  %p3954_p2 = scmp.lt.s32.totalorder %s3945_s14, %s3945_s14 }
  0x54   : > { %p3948_p12 = pnand %p3946_p9, %p4184_p13  ;;  %p3955_p4 = por %p3954_p2, %p3953_p1 }
  0x56   : > { %p3949_p0 = pneg %p3948_p12 }
  0x58   : > { %p3956_p8 = pnand %p3955_p4, %p3949_p0 }
  0x5a   : > { %3959 = shalt.err (!%p3956_p8)
}
  0x5b   : > { %s4712_s29 = smov 4   ;;  %s4713_s10 = smov 64  }
  0x5c   : > { %3420 = dma.hbm_to_vmem [thread:$0]  (!%p4170_p11), %s4693_s5, 3072, %s253_s19, [#allocation9], %s4713_s10, %s4713_s10, %s4712_s29  }
  0x5d   : > { %s29_s20 = ssub.s32 %s4064_s27, %s4232_s21  ;;  %s32_s12 = sadd.s32 1, %s4060_s26 }
  0x5e   : > { %p30_p4 = scmp.eq.s32.totalorder %s29_s20, 0  ;;  %p39_p8 = scmp.ne.s32.totalorder %s4060_s26, %s4056_s25 }
  0x5f   : > { %p40_p13 = scmp.eq.s32.totalorder %s4064_s27, 0  ;;  %p3432_p6 = scmp.lt.s32.totalorder %s4064_s27, 2 }
  0x60   : > { %s4263_s13 = scalar_select %p30_p4, %s4060_s26, %s32_s12  }
  0x61   : > { %p41_p10 = por %p40_p13, %p39_p8  ;;  %p4714_p3 = scmp.eq.s32.totalorder %s4140_s28, 1 }
  0x62   : > { %s269_s16 = sand.u32 1, %s4060_s26   ;;  %s3137_s17 = sshll.u32 %s4064_s27, 9 }
  0x63   : > { %p4267_p5 = por %p4714_p3, %p39_p8  ;;  %s2896_s18 = sshll.u32 %s269_s16, 5 }
  0x64   : > { %s4276_s19 = scalar_lea.hbm %s4688_s0, %s3137_s17  ;;  %s273_s11 = scalar_lea.vmem [#allocation2], %s2896_s18 }
  0x65   : > { %s280_s14 = sshll.u32 %s273_s11, 4  ;;  %p4278_p11 = pnand %p3432_p6, %p41_p10  ;;  %s4282_s14 = int_to_ptr.vmem [resolvable:$true] %s280_s14 }
  0x66   : > { %s4284_s8 = scalar_lea.sflag [#allocation3], %s269_s16  ;;  %s3960_s20 = scalar_lea.hbm %s4276_s19, 512 }
  0x67   : > { %p3961_p7 = scmp.ne.s32.totalorder %s4276_s19, %s3960_s20  ;;  %p3962_p9 = pneg %p4278_p11 }
  0x68   : > { %s3965_s18 = scalar_lea.hbm %s4688_s0, 1024  ;;  %p3966_p1 = scmp.lt.u32.totalorder %s4276_s19, %s4688_s0 }
  0x69   : > { %p3963_p12 = pnand %p3962_p9, %p3961_p7  ;;  %p3967_p2 = scmp.lt.u32.totalorder %s3965_s18, %s3960_s20 }
  0x6a   : > { %p3969_p8 = scmp.lt.u32.totalorder %s3960_s20, %s4276_s19 }
  0x6b   : > { %p3964_p0 = pneg %p3963_p12  ;;  %p3968_p4 = por %p3967_p2, %p3966_p1 }
  0x6d   : > { %p3970_p13 = por %p3969_p8, %p3968_p4 }
  0x6f   : > { %p3971_p6 = pnand %p3970_p13, %p3964_p0 }
  0x71   : > { %3974 = shalt.err (!%p3971_p6)
}
  0x72   : > { %s3975_s16 = scalar_lea.vmem %s4282_s14, 512  ;;  %s4073_s11 = smov [#allocation2]  }
  0x73   : > { %p3976_p10 = scmp.ne.s32.totalorder %s4282_s14, %s3975_s16  ;;  %s3980_s12 = sshll.u32 %s4073_s11, 4  ;;  %s3981_s12 = int_to_ptr.vmem [resolvable:$false] %s3980_s12 }
  0x74   : > { %s3982_s17 = scalar_lea.vmem %s3981_s12, 1024  ;;  %p3983_p12 = scmp.lt.s32.totalorder %s4282_s14, %s3981_s12 }
  0x75   : > { %p3978_p3 = pnand %p3976_p10, %p3962_p9  ;;  %p3984_p1 = scmp.lt.s32.totalorder %s3982_s17, %s3975_s16 }
  0x77   : > { %p3979_p7 = pneg %p3978_p3  ;;  %p3985_p2 = por %p3984_p1, %p3983_p12 }
  0x79   : > { %p3986_p4 = pnand %p3985_p2, %p3979_p7 }
  0x7b   : > { %3989 = shalt.err (!%p3986_p4)
}
  0x7c   : > { %3424 = dma.hbm_to_vmem [thread:$0]  (!%p4278_p11), %s4276_s19, 512, %s4282_s14, %s4284_s8, %s4713_s10, %s4713_s10, %s4712_s29  }
  0x7d   : > { %p4717_p9 = scmp.ne.s32.totalorder %s4708_s9, 0 }
  0x7e   : > { %s4318_s20 = sand.u32 (!%p4717_p9), 1, %s4056_s25   ;;  %p4718_p0 = scmp.ne.s32.totalorder (!%p4717_p9), %s4705_s30, 0 }
  0x7f   : > { %292 = sbr.rel (%p4717_p9) target bundleno = 1948 (0x79c), region = 48  ;;  %s2900_s18 = sshll.u32 (!%p4717_p9), %s4318_s20, 5 }
  0x80   : > { %s295_s22 = scalar_lea.sflag (!%p4717_p9), [#allocation3], %s4318_s20  ;;  %s4322_s23 = scalar_lea.vmem (!%p4717_p9), [#allocation2], %s2900_s18 }
  0x86   : > { %4035 = dma.done.wait (%p4718_p0), %s295_s22, 512  }
  0x87   : > { %4037 = vsyncadd (%p4718_p0), %s295_s22, 4294966784  ;;  %p4719_p11 = scmp.eq.s32.totalorder %s4140_s28, 0 }
  0x89   : > { %4039 = dma.done.wait (%p4719_p11), [#allocation6], 19456   ;;  %p4720_p8 = pmov %p4719_p11 }
  0x8b   : > { %4041 = vsyncadd (%p4720_p8), [#allocation6], 4294947840  ;;  %p4721_p13 = pmov %p4720_p8 }
  0x8c   : > { %p4722_p6 = pmov %p4720_p8 }
  0x8d   : > { %4043 = dma.done.wait (%p4721_p13), [#allocation9], 3072  }
  0x8e   : > { %4045 = vsyncadd (%p4722_p6), [#allocation9], 4294964224  ;;  %v3480_v0 = vld [vmem:[#allocation5] sm:$0xff]   ;;  %v3481_v1 = vld [vmem:[#allocation5 + $0x8] sm:$0xff]   ;;  %v4074_v60 = vmov 0   ;;  %vm518_vm0 = vcmask 1040384  }
  0x8f   : > { %3187 = vmatprep.subr.bf16.mxu0 %v3480_v0  ;;  %v3482_v2 = vld [vmem:[#allocation5 + $0x10] sm:$0xff]   ;;  %v3483_v3 = vld [vmem:[#allocation5 + $0x18] sm:$0xff]   ;;  %v3488_v4 = vld [vmem:[%s4322_s23] sm:$0xff]   ;;  %vm547_vm1 = vcmask 1046528   ;;  %vm573_vm2 = vcmask 1045504   ;;  %vm4075_vm4 = vmmov 1  }
  0x90   : > { %3188 = vmatpush3.bf16.msra.mxu0 %v3480_v0  ;;  %3203 = vmatprep.mubr.bf16.mxu0 %v3488_v4  ;;  %v3484_v5 = vld [vmem:[#allocation5 + $0x20] sm:$0xff]   ;;  %v3495_v8 = vld [vmem:[#allocation7 + $0x14] ss:$8 sps:$4 sm:$0xff]   ;;  %v3485_v9 = vld [vmem:[#allocation5 + $0x28] sm:$0xff]   ;;  %vm1277_vm6 = vcmask 1041408   ;;  %vm1331_vm7 = vcmask 1043456  }
  0x91   : > { %3189 = vmatprep.subr.bf16.mxu0 %v3481_v1  ;;  %v3492_v6 = vld [vmem:[#allocation7 + $0x4] ss:$8 sps:$4 sm:$0xff]   ;;  %v3494_v7 = vld [vmem:[#allocation7] ss:$8 sps:$4 sm:$0xff]   ;;  %v3497_v10 = vld [vmem:[#allocation7 + $0x10] ss:$8 sps:$4 sm:$0xff]  }
  0x92   : > { %911 = vmatprep.subr.bf16.mxu1 %v3492_v6  ;;  %v3498_v11 = vld [vmem:[#allocation7 + $0x24] ss:$8 sps:$4 sm:$0xff]   ;;  %v3486_v12 = vld [vmem:[#allocation5 + $0x30] sm:$0xff]   ;;  %v3500_v13 = vld [vmem:[#allocation7 + $0x20] ss:$8 sps:$4 sm:$0xff]   ;;  %s3138_s29 = sshll.u32 %s4140_s28, 10 }
  0x93   : > { %912 = vmatpush1.bf16.msra.mxu1 %v3494_v7  ;;  %v3501_v14 = vld [vmem:[#allocation7 + $0x34] ss:$8 sps:$4 sm:$0xff]   ;;  %v3503_v16 = vld [vmem:[#allocation7 + $0x30] ss:$8 sps:$4 sm:$0xff]   ;;  %v3504_v17 = vld [vmem:[#allocation7 + $0x44] ss:$8 sps:$4 sm:$0xff]   ;;  %s4643_s28 = scalar_lea.hbm %s4695_s7, %s3138_s29 }
  0x94   : > { %3190 = vmatpush3.bf16.msra.mxu0 %v3481_v1  ;;  %913 = vmatprep.subr.bf16.mxu1 %v3495_v8  ;;  %v3487_v15 = vld [vmem:[#allocation5 + $0x38] sm:$0xff]   ;;  %v3506_v18 = vld [vmem:[#allocation7 + $0x40] ss:$8 sps:$4 sm:$0xff]   ;;  %v3518_v20 = vld [vmem:[#allocation7 + $0x104] ss:$8 sps:$4 sm:$0xff]   ;;  %s2775_s14 = scalar_lea.sflag [#allocation4], %s4318_s20 }
  0x95   : > { %3191 = vmatprep.subr.bf16.mxu0 %v3482_v2  ;;  %v3507_v19 = vld [vmem:[#allocation7 + $0x54] ss:$8 sps:$4 sm:$0xff]   ;;  %v3489_v21 = vld [vmem:[%s4322_s23 + $0x8] sm:$0xff]   ;;  %v3509_v23 = vld [vmem:[#allocation7 + $0x50] ss:$8 sps:$4 sm:$0xff]   ;;  %s4076_s8 = smov [#allocation10]  }
  0x96   : > { %v3490_v22 = vld [vmem:[%s4322_s23 + $0x10] sm:$0xff]   ;;  %v3510_v24 = vld [vmem:[#allocation7 + $0x64] ss:$8 sps:$4 sm:$0xff]   ;;  %v3516_v25 = vld [vmem:[#allocation7 + $0x100] ss:$8 sps:$4 sm:$0xff]   ;;  %s3994_s16 = sshll.u32 %s4076_s8, 4  ;;  %s3995_s16 = int_to_ptr.vmem [resolvable:$false] %s3994_s16 }
  0x97   : > { %914 = vmatpush1.bf16.msra.mxu1 %v3497_v10  ;;  %v3512_v26 = vld [vmem:[#allocation7 + $0x60] ss:$8 sps:$4 sm:$0xff]   ;;  %v3524_v27 = vld [vmem:[#allocation7 + $0x114] ss:$8 sps:$4 sm:$0xff]   ;;  %v3522_v29 = vld [vmem:[#allocation7 + $0x110] ss:$8 sps:$4 sm:$0xff]  }
  0x98   : > { %3192 = vmatpush3.bf16.msra.mxu0 %v3482_v2  ;;  %915 = vmatprep.subr.bf16.mxu1 %v3498_v11  ;;  %v3513_v28 = vld [vmem:[#allocation7 + $0x74] ss:$8 sps:$4 sm:$0xff]   ;;  %v3530_v30 = vld [vmem:[#allocation7 + $0x124] ss:$8 sps:$4 sm:$0xff]   ;;  %v3515_v32 = vld [vmem:[#allocation7 + $0x70] ss:$8 sps:$4 sm:$0xff]  }
  0x99   : > { %3193 = vmatprep.subr.bf16.mxu0 %v3483_v3  ;;  %v3491_v31 = vld [vmem:[%s4322_s23 + $0x18] sm:$0xff]   ;;  %v3519_v33 = vld [vmem:[#allocation7 + $0x84] ss:$8 sps:$4 sm:$0xff]   ;;  %v3528_v34 = vld [vmem:[#allocation7 + $0x120] ss:$8 sps:$4 sm:$0xff]   ;;  %s2904_s23 = sshll.u32 %s4318_s20, 6 }
  0x9a   : > { %v3536_v35 = vld [vmem:[#allocation7 + $0x134] ss:$8 sps:$4 sm:$0xff]   ;;  %v3521_v36 = vld [vmem:[#allocation7 + $0x80] ss:$8 sps:$4 sm:$0xff]   ;;  %v3534_v38 = vld [vmem:[#allocation7 + $0x130] ss:$8 sps:$4 sm:$0xff]  }
  0x9b   : > { %916 = vmatpush1.bf16.msra.mxu1 %v3500_v13  ;;  %v3525_v37 = vld [vmem:[#allocation7 + $0x94] ss:$8 sps:$4 sm:$0xff]   ;;  %v3542_v39 = vld [vmem:[#allocation7 + $0x144] ss:$8 sps:$4 sm:$0xff]   ;;  %v3527_v40 = vld [vmem:[#allocation7 + $0x90] ss:$8 sps:$4 sm:$0xff]  }
  0x9c   : > { %3194 = vmatpush3.bf16.msra.mxu0 %v3483_v3  ;;  %917 = vmatprep.subr.bf16.mxu1 %v3501_v14  ;;  %v3531_v41 = vld [vmem:[#allocation7 + $0xa4] ss:$8 sps:$4 sm:$0xff]   ;;  %v3540_v42 = vld [vmem:[#allocation7 + $0x140] ss:$8 sps:$4 sm:$0xff]   ;;  %v3537_v44 = vld [vmem:[#allocation7 + $0xb4] ss:$8 sps:$4 sm:$0xff]  }
  0x9d   : > { %3195 = vmatprep.subr.bf16.mxu0 %v3484_v5  ;;  %v3533_v43 = vld [vmem:[#allocation7 + $0xa0] ss:$8 sps:$4 sm:$0xff]   ;;  %v3539_v45 = vld [vmem:[#allocation7 + $0xb0] ss:$8 sps:$4 sm:$0xff]   ;;  %v3543_v46 = vld [vmem:[#allocation7 + $0xc4] ss:$8 sps:$4 sm:$0xff]  }
  0x9e   : > { %v3545_v47 = vld [vmem:[#allocation7 + $0xc0] ss:$8 sps:$4 sm:$0xff]   ;;  %v3548_v48 = vld [vmem:[#allocation7 + $0x154] ss:$8 sps:$4 sm:$0xff]   ;;  %v3546_v49 = vld [vmem:[#allocation7 + $0x150] ss:$8 sps:$4 sm:$0xff]  }
  0x9f   : > { %918 = vmatpush1.bf16.msra.mxu1 %v3503_v16  ;;  %v3549_v50 = vld [vmem:[#allocation7 + $0xd4] ss:$8 sps:$4 sm:$0xff]   ;;  %v3551_v51 = vld [vmem:[#allocation7 + $0xd0] ss:$8 sps:$4 sm:$0xff]   ;;  %v3554_v52 = vld [vmem:[#allocation7 + $0x164] ss:$8 sps:$4 sm:$0xff]  }
  0xa0   : > { %3196 = vmatpush3.bf16.msra.mxu0 %v3484_v5  ;;  %919 = vmatprep.subr.bf16.mxu1 %v3504_v17  ;;  %v3552_v53 = vld [vmem:[#allocation7 + $0x160] ss:$8 sps:$4 sm:$0xff]   ;;  %v3555_v54 = vld [vmem:[#allocation7 + $0xe4] ss:$8 sps:$4 sm:$0xff]   ;;  %v3560_v56 = vld [vmem:[#allocation7 + $0x174] ss:$8 sps:$4 sm:$0xff]  }
  0xa1   : > { %3197 = vmatprep.subr.bf16.mxu0 %v3485_v9  ;;  %v3557_v55 = vld [vmem:[#allocation7 + $0xe0] ss:$8 sps:$4 sm:$0xff]   ;;  %v3558_v57 = vld [vmem:[#allocation7 + $0x170] ss:$8 sps:$4 sm:$0xff]   ;;  %v3561_v58 = vld [vmem:[#allocation7 + $0xf4] ss:$8 sps:$4 sm:$0xff]  }
  0xa2   : > { %v3563_v59 = vld [vmem:[#allocation7 + $0xf0] ss:$8 sps:$4 sm:$0xff]   ;;  %v2905_v61 = vld [vmem:[%s4690_s2] ss:$0 sm:$0xff]  ;;  %vm2966_vm3 = vmneg %vm518_vm0  ;;  %s340_s30 = scalar_lea.vmem [#allocation10], %s2904_s23  ;;  %s3996_s11 = scalar_lea.vmem %s3995_s16, 2048 }
  0xa3   : > { %920 = vmatpush1.bf16.msra.mxu1 %v3506_v18  ;;  %vm2967_vm5 = vmpackc.low %vm4075_vm4, %vm2966_vm3  ;;  %s2788_s9 = sshll.u32 %s340_s30, 4  ;;  %s4636_s9 = int_to_ptr.vmem [resolvable:$true] %s2788_s9 }
  0xa4   : > { %3198 = vmatpush3.bf16.msra.mxu0 %v3485_v9  ;;  %921 = vmatprep.subr.bf16.mxu1 %v3507_v19  ;;  %vm3036_vm8 = vmneg %vm1277_vm6  ;;  %s3990_s1 = scalar_lea.vmem %s4636_s9, 1024  ;;  %p3997_p12 = scmp.lt.s32.totalorder %s4636_s9, %s3995_s16 }
  0xa5   : > { %3199 = vmatprep.subr.bf16.mxu0 %v3486_v12  ;;  %vm3037_vm9 = vmpackc.low %vm4075_vm4, %vm3036_vm8  ;;  %p3991_p10 = scmp.ne.s32.totalorder %s4636_s9, %s3990_s1  ;;  %p3998_p1 = scmp.lt.s32.totalorder %s3996_s11, %s3990_s1 }
  0xa6   : > { %vm3107_vm10 = vmneg %vm1331_vm7 }
  0xa7   : > { %922 = vmatpush1.bf16.msra.mxu1 %v3509_v23  ;;  %vm3108_vm11 = vmpackc.low %vm4075_vm4, %vm3107_vm10  ;;  %p3992_p3 = pnand %p3991_p10, %p4267_p5  ;;  %p3999_p2 = por %p3998_p1, %p3997_p12 }
  0xa8   : > { %3200 = vmatpush3.bf16.msra.mxu0 %v3486_v12  ;;  %923 = vmatprep.subr.bf16.mxu1 %v3510_v24  ;;  %vm3111_vm12 = vmpackc.low %vm1331_vm7, %vm4075_vm4 }
  0xa9   : > { %3201 = vmatprep.subr.bf16.mxu0 %v3487_v15  ;;  %p3993_p7 = pneg %p3992_p3 }
  0xab   : > { %924 = vmatpush1.bf16.msra.mxu1 %v3512_v26  ;;  %p4000_p4 = pnand %p3999_p2, %p3993_p7 }
  0xac   : > { %3202 = vmatpush3.bf16.msra.mxu0 %v3487_v15  ;;  %925 = vmatprep.subr.bf16.mxu1 %v3513_v28 }
  0xad   : > { %984 = vmatprep.subr.bf16.mxu0 %v3518_v20 }
  0xaf   : > { %3204 = vmatmul.mubr.bf16.vlgmr.msra.gmra.mrb[0].mxu0 %v3489_v21  ;;  %926 = vmatpush1.bf16.msra.mxu1 %v3515_v32 }
  0xb0   : > { %3207 = vmatprep.mubr.bf16.mxu0 %v3490_v22  ;;  %985 = vmatpush1.bf16.msra.mxu0 %v3516_v25 }
  0xb1   : > { %986 = vmatprep.subr.bf16.mxu0 %v3524_v27  ;;  %927 = vmatprep.subr.bf16.mxu1 %v3519_v33 }
  0xb3   : > { %928 = vmatpush1.bf16.msra.mxu1 %v3521_v36 }
  0xb4   : > { %987 = vmatpush1.bf16.msra.mxu0 %v3522_v29  ;;  %929 = vmatprep.subr.bf16.mxu1 %v3525_v37 }
  0xb5   : > { %988 = vmatprep.subr.bf16.mxu0 %v3530_v30 }
  0xb7   : > { %3208 = vmatmul.mubr.bf16.gmra.mrb[4].mxu0 %v3491_v31  ;;  %930 = vmatpush1.bf16.msra.mxu1 %v3527_v40 }
  0xb8   : > { %989 = vmatpush1.bf16.msra.mxu0 %v3528_v34  ;;  %931 = vmatprep.subr.bf16.mxu1 %v3531_v41 }
  0xb9   : > { %990 = vmatprep.subr.bf16.mxu0 %v3536_v35  ;;  %1016 = vmatprep.mubr.bf16.mxu0 %v4074_v60 }
  0xbb   : > { %932 = vmatpush1.bf16.msra.mxu1 %v3533_v43 }
  0xbc   : > { %991 = vmatpush1.bf16.msra.mxu0 %v3534_v38  ;;  %933 = vmatprep.subr.bf16.mxu1 %v3537_v44 }
  0xbd   : > { %992 = vmatprep.subr.bf16.mxu0 %v3542_v39 }
  0xbf   : > { %934 = vmatpush1.bf16.msra.mxu1 %v3539_v45 }
  0xc0   : > { %993 = vmatpush1.bf16.msra.mxu0 %v3540_v42  ;;  %935 = vmatprep.subr.bf16.mxu1 %v3543_v46 }
  0xc1   : > { %994 = vmatprep.subr.bf16.mxu0 %v3548_v48 }
  0xc3   : > { %936 = vmatpush1.bf16.msra.mxu1 %v3545_v47 }
  0xc4   : > { %937 = vmatprep.subr.bf16.mxu1 %v3549_v50  ;;  %995 = vmatpush1.bf16.msra.mxu0 %v3546_v49 }
  0xc5   : > { %996 = vmatprep.subr.bf16.mxu0 %v3554_v52 }
  0xc7   : > { %938 = vmatpush1.bf16.msra.mxu1 %v3551_v51 }
  0xc8   : > { %939 = vmatprep.subr.bf16.mxu1 %v3555_v54  ;;  %997 = vmatpush1.bf16.msra.mxu0 %v3552_v53 }
  0xc9   : > { %998 = vmatprep.subr.bf16.mxu0 %v3560_v56 }
  0xcb   : > { %940 = vmatpush1.bf16.msra.mxu1 %v3557_v55 }
  0xcc   : > { %999 = vmatpush1.bf16.msra.mxu0 %v3558_v57  ;;  %941 = vmatprep.subr.bf16.mxu1 %v3561_v58 }
  0xcf   : > { %942 = vmatpush1.bf16.msra.mxu1 %v3563_v59 }
 0x182   : > { %v3205_v62 = vpop.f32.mrb[0].mxu0 }
 0x183   : > { %v479_v63 = vpop.f32.mrb[1].mxu0  ;;  %v4344_v0 = vadd.f32 %v3205_v62, %v2905_v61 }
 0x184   : > { %v4346_v1 = vadd.f32 %v2905_v61, %v479_v63  ;;  %v3206_v2 = vpop.f32.mrb[2].mxu0 }
 0x185   : > { %v4348_v3 = vadd.f32 %v3206_v2, %v2905_v61  ;;  %v482_v4 = vpop.f32.mrb[3].mxu0  ;;  %v522_v7 = vrot.slane %v4344_v0, 7 }
 0x186   : > { %v519_v5 = vrot.slane %v4346_v1, 7  ;;  %v4351_v6 = vadd.f32 %v2905_v61, %v482_v4 }
 0x187   : > { %v524_v10 = vrot.slane %v4348_v3, 7 }
 0x188   : > { %v520_v8 = vrot.slane %v4351_v6, 7  ;;  %v543_v9 = vsel %vm518_vm0, 0.0, %v519_v5 }
 0x189   : > { %v548_v14 = vrot.slane %v543_v9, 1  ;;  %v574_v15 = vrot.slane %v543_v9, 2  ;;  %v525_v24 = vsel %vm518_vm0, %v522_v7, %v524_v10 }
 0x18a   : > { %v521_v11 = vsel %vm518_vm0, %v519_v5, %v520_v8  ;;  %v523_v12 = vsel %vm518_vm0, %v520_v8, %v522_v7  ;;  %v3209_v13 = vpop.f32.mrb[4].mxu0  ;;  %v553_v36 = vrot.slane %v525_v24, 1  ;;  %v579_v42 = vrot.slane %v525_v24, 2 }
 0x18b   : > { %v575_v16 = vrot.slane %v521_v11, 2  ;;  %v577_v17 = vrot.slane %v523_v12, 2  ;;  %v4359_v18 = vadd.f32 %v3209_v13, %v2905_v61  ;;  %v495_v19 = vpop.f32.mrb[5].mxu0  ;;  %v549_v20 = vrot.slane %v521_v11, 1 }
 0x18c   : > { %v4361_v21 = vadd.f32 %v2905_v61, %v495_v19  ;;  %v3210_v22 = vpop.f32.mrb[6].mxu0  ;;  %v551_v23 = vrot.slane %v523_v12, 1  ;;  %v2968_v39 = vpack.c.bf16 %v521_v11, %v519_v5  ;;  %v3564_v19 = vld [vmem:[#allocation8] sm:$0xff]  }
 0x18d   : > { %v498_v25 = vpop.f32.mrb[7].mxu0  ;;  %v550_v26 = vsel %vm547_vm1, %v548_v14, %v549_v20  ;;  %v576_v27 = vsel %vm573_vm2, %v574_v15, %v575_v16  ;;  %v578_v31 = vsel %vm573_vm2, %v575_v16, %v577_v17  ;;  %v530_v32 = vrot.slane %v4359_v18, 7  ;;  %3211 = vmatprep.subr.bf16.mxu0 %v3564_v19 }
 0x18e   : > { %v526_v28 = vrot.slane %v4361_v21, 7  ;;  %v4368_v29 = vadd.f32 %v2905_v61, %v498_v25  ;;  %v552_v30 = vsel %vm547_vm1, %v549_v20, %v551_v23  ;;  %v4373_v33 = vadd.f32 %v3210_v22, %v2905_v61  ;;  %v3565_v20 = vld [vmem:[#allocation8 + $0x8] sm:$0xff]   ;;  %v3566_v22 = vld [vmem:[#allocation8 + $0x10] sm:$0xff]  }
 0x18f   : > { %v600_v34 = vpack.c.bf16 %v552_v30, %v550_v26  ;;  %v601_v35 = vpack.c.bf16 %v578_v31, %v576_v27  ;;  %v554_v49 = vsel %vm547_vm1, %v551_v23, %v553_v36  ;;  %v580_v52 = vsel %vm573_vm2, %v577_v17, %v579_v42  ;;  %v3567_v23 = vld [vmem:[#allocation8 + $0x18] sm:$0xff]   ;;  %v3569_v25 = vld [vmem:[#allocation8 + $0x28] sm:$0xff]   ;;  %v3570_v26 = vld [vmem:[#allocation8 + $0x30] sm:$0xff]  }
 0x190   : > { %v527_v37 = vsel %vm518_vm0, %v524_v10, %v526_v28  ;;  %v528_v38 = vrot.slane %v4368_v29, 7  ;;  %v532_v43 = vrot.slane %v4373_v33, 7  ;;  %v602_v61 = vpack.c.bf16 %v525_v24, %v523_v12  ;;  %v3568_v24 = vld [vmem:[#allocation8 + $0x20] sm:$0xff]   ;;  %v3571_v27 = vld [vmem:[#allocation8 + $0x38] sm:$0xff]  }
 0x191   : > { %v555_v40 = vrot.slane %v527_v37, 1  ;;  %v581_v41 = vrot.slane %v527_v37, 2  ;;  %943 = vmatprep.mubr.bf16.mxu1 %v600_v34  ;;  %1017 = vmatmul.mubr.bf16.vlgmr.msra.gmra.mrb[8].mxu0 %v601_v35  ;;  %v661_v30 = vlaneseq  ;;  %v659_v34 = vld [vmem:[%s4692_s4] sm:$0x3] }
 0x192   : > { %2969 = vmatmul.mubr.msk.bf16.vlgmr.msra.gmra.mrb[0].mxu1 %vm2967_vm5, %v2968_v39  ;;  %1026 = vmatprep.mubr.bf16.mxu0 %v4074_v60  ;;  %v529_v44 = vsel %vm518_vm0, %v526_v28, %v528_v38  ;;  %v531_v45 = vsel %vm518_vm0, %v528_v38, %v530_v32  ;;  %v533_v55 = vsel %vm518_vm0, %v530_v32, %v532_v43  ;;  %v544_v56 = vsel %vm518_vm0, %v532_v43, 0.0  ;;  %v3574_v28 = vld [vmem:[#allocation7 + $0x184] ss:$8 sps:$4 sm:$0xff]  }
 0x193   : > { %v556_v46 = vsel %vm547_vm1, %v553_v36, %v555_v40  ;;  %v557_v47 = vrot.slane %v529_v44, 1  ;;  %v559_v48 = vrot.slane %v531_v45, 1  ;;  %v582_v50 = vsel %vm573_vm2, %v579_v42, %v581_v41  ;;  %3212 = vmatpush3.bf16.msra.mxu0 %v3564_v19 }
 0x194   : > { %v603_v51 = vpack.c.bf16 %v556_v46, %v554_v49  ;;  %v604_v57 = vpack.c.bf16 %v582_v50, %v580_v52  ;;  %v583_v58 = vrot.slane %v529_v44, 2  ;;  %v585_v59 = vrot.slane %v531_v45, 2  ;;  %3213 = vmatprep.subr.bf16.mxu0 %v3565_v20 }
 0x195   : > { %v558_v53 = vsel %vm547_vm1, %v555_v40, %v557_v47  ;;  %v560_v54 = vsel %vm547_vm1, %v557_v47, %v559_v48  ;;  %v561_v63 = vrot.slane %v533_v55, 1  ;;  %v563_v2 = vrot.slane %v544_v56, 1 }
 0x196   : > { %953 = vmatprep.mubr.bf16.mxu1 %v603_v51  ;;  %v606_v62 = vpack.c.bf16 %v560_v54, %v558_v53  ;;  %v584_v4 = vsel %vm573_vm2, %v581_v41, %v583_v58  ;;  %v586_v5 = vsel %vm573_vm2, %v583_v58, %v585_v59  ;;  %v587_v10 = vrot.slane %v533_v55, 2 }
 0x197   : > { %v562_v7 = vsel %vm547_vm1, %v559_v48, %v561_v63  ;;  %v564_v8 = vsel %vm547_vm1, %v561_v63, %v563_v2  ;;  %v607_v9 = vpack.c.bf16 %v586_v5, %v584_v4  ;;  %v589_v11 = vrot.slane %v544_v56, 2  ;;  %3214 = vmatpush3.bf16.msra.mxu0 %v3565_v20 }
 0x198   : > { %v605_v12 = vpack.c.bf16 %v529_v44, %v527_v37  ;;  %v609_v13 = vpack.c.bf16 %v564_v8, %v562_v7  ;;  %v588_v14 = vsel %vm573_vm2, %v585_v59, %v587_v10  ;;  %v608_v17 = vpack.c.bf16 %v533_v55, %v531_v45  ;;  %3215 = vmatprep.subr.bf16.mxu0 %v3566_v22 }
 0x199   : > { %1027 = vmatmul.mubr.bf16.gmra.mrb[12].mxu0 %v604_v57  ;;  %v590_v15 = vsel %vm573_vm2, %v587_v10, %v589_v11  ;;  %v662_v31 = vshrl.u32 %v661_v30, 7 }
 0x19a   : > { %954 = vmatmul.mubr.bf16.gmra.mrb[4].mxu1 %v602_v61  ;;  %1036 = vmatprep.mubr.bf16.mxu0 %v4074_v60  ;;  %v610_v16 = vpack.c.bf16 %v590_v15, %v588_v14 }
 0x19b   : > { %963 = vmatprep.mubr.bf16.mxu1 %v606_v62  ;;  %3216 = vmatpush3.bf16.msra.mxu0 %v3566_v22  ;;  %v4398_v32 = vsub.s32 0, %v662_v31  ;;  %v4403_v35 = vsub.s32 1, %v662_v31 }
 0x19c   : > { %3217 = vmatprep.subr.bf16.mxu0 %v3567_v23 }
 0x19d   : > { %v4406_v36 = vrot.slane %v659_v34, %v4398_v32  ;;  %v4409_v37 = vrot.slane %v659_v34, %v4403_v35 }
 0x19f   : > { %3218 = vmatpush3.bf16.msra.mxu0 %v3567_v23 }
 0x1a0   : > { %3219 = vmatprep.subr.bf16.mxu0 %v3568_v24 }
 0x1a1   : > { %1037 = vmatmul.mubr.bf16.gmra.mrb[16].mxu0 %v607_v9 }
 0x1a2   : > { %964 = vmatmul.mubr.bf16.gmra.mrb[8].mxu1 %v605_v12  ;;  %1046 = vmatprep.mubr.bf16.mxu0 %v4074_v60 }
 0x1a3   : > { %973 = vmatprep.mubr.bf16.mxu1 %v609_v13  ;;  %3220 = vmatpush3.bf16.msra.mxu0 %v3568_v24 }
 0x1a4   : > { %3221 = vmatprep.subr.bf16.mxu0 %v3569_v25 }
 0x1a7   : > { %3222 = vmatpush3.bf16.msra.mxu0 %v3569_v25 }
 0x1a8   : > { %3223 = vmatprep.subr.bf16.mxu0 %v3570_v26 }
 0x1a9   : > { %1047 = vmatmul.mubr.bf16.gmra.mrb[20].mxu0 %v610_v16 }
 0x1aa   : > { %974 = vmatmul.mubr.bf16.gmra.mrb[12].mxu1 %v608_v17 }
 0x1ab   : > { %3224 = vmatpush3.bf16.msra.mxu0 %v3570_v26 }
 0x1ac   : > { %3225 = vmatprep.subr.bf16.mxu0 %v3571_v27 }
 0x1af   : > { %3226 = vmatpush3.bf16.msra.mxu0 %v3571_v27 }
 0x1b0   : > { %1671 = vmatprep.subr.bf16.mxu0 %v3574_v28 }
 0x264   : > { %v1018_v38 = vpop.f32.mrb[8].mxu0 }
 0x265   : > { %v945_v39 = vpop.f32.mrb[0].mxu1  ;;  %v1020_v40 = vpop.f32.mrb[9].mxu0 }
 0x266   : > { %v946_v41 = vadd.f32 %v945_v39, %v4406_v36  ;;  %v947_v42 = vpop.f32.mrb[1].mxu1  ;;  %v1022_v43 = vpop.f32.mrb[10].mxu0 }
 0x267   : > { %v948_v44 = vadd.f32 %v947_v42, %v4409_v37  ;;  %v949_v45 = vpop.f32.mrb[2].mxu1  ;;  %v1024_v46 = vpop.f32.mrb[11].mxu0 }
 0x268   : > { %v1019_v47 = vadd.f32 %v1018_v38, %v946_v41  ;;  %v950_v48 = vadd.f32 %v949_v45, %v4406_v36  ;;  %v951_v49 = vpop.f32.mrb[3].mxu1 }
 0x269   : > { %v1021_v50 = vadd.f32 %v1020_v40, %v948_v44  ;;  %v952_v51 = vadd.f32 %v951_v49, %v4409_v37 }
 0x26a   : > { %v1023_v52 = vadd.f32 %v1022_v43, %v950_v48 }
 0x26b   : > { %v2970_v53 = vmul.f32 -1.442695, %v1021_v50  ;;  %v1025_v54 = vadd.f32 %v1024_v46, %v952_v51 }
 0x26c   : > { %v1028_v55 = vpop.f32.mrb[12].mxu0 }
 0x26d   : > { %3732 = vpow2.f32 %v2970_v53  ;;  %v2971_v56 = vmul.f32 -1.442695, %v1025_v54  ;;  %v955_v57 = vpop.f32.mrb[4].mxu1  ;;  %v1030_v58 = vpop.f32.mrb[13].mxu0 }
 0x26e   : > { %v956_v59 = vadd.f32 %v955_v57, %v4406_v36  ;;  %v957_v61 = vpop.f32.mrb[5].mxu1  ;;  %v1032_v62 = vpop.f32.mrb[14].mxu0 }
 0x26f   : > { %3734 = vpow2.f32 %v2971_v56  ;;  %v958_v63 = vadd.f32 %v957_v61, %v4409_v37  ;;  %v959_v2 = vpop.f32.mrb[6].mxu1  ;;  %v1034_v4 = vpop.f32.mrb[15].mxu0 }
 0x270   : > { %v1029_v5 = vadd.f32 %v1028_v55, %v956_v59  ;;  %v960_v7 = vadd.f32 %v959_v2, %v4406_v36  ;;  %v961_v8 = vpop.f32.mrb[7].mxu1 }
 0x271   : > { %v1031_v9 = vadd.f32 %v1030_v58, %v958_v63  ;;  %v962_v10 = vadd.f32 %v961_v8, %v4409_v37 }
 0x272   : > { %v1033_v11 = vadd.f32 %v1032_v62, %v960_v7 }
 0x273   : > { %v2972_v12 = vmul.f32 -1.442695, %v1031_v9  ;;  %v1035_v13 = vadd.f32 %v1034_v4, %v962_v10 }
 0x274   : > { %v1038_v14 = vpop.f32.mrb[16].mxu0 }
 0x275   : > { %3736 = vpow2.f32 %v2972_v12  ;;  %v2973_v15 = vmul.f32 -1.442695, %v1035_v13  ;;  %v965_v16 = vpop.f32.mrb[8].mxu1  ;;  %v1040_v17 = vpop.f32.mrb[17].mxu0 }
 0x276   : > { %v966_v19 = vadd.f32 %v965_v16, %v4406_v36  ;;  %v967_v20 = vpop.f32.mrb[9].mxu1  ;;  %v1042_v22 = vpop.f32.mrb[18].mxu0 }
 0x277   : > { %v3733_v23 = vpop.eup %3732  ;;  %3738 = vpow2.f32 %v2973_v15  ;;  %v968_v24 = vadd.f32 %v967_v20, %v4409_v37  ;;  %v969_v25 = vpop.f32.mrb[10].mxu1 }
 0x278   : > { %v1044_v26 = vpop.f32.mrb[19].mxu0  ;;  %v1089_v27 = vadd.f32 1.0, %v3733_v23  ;;  %v1039_v28 = vadd.f32 %v1038_v14, %v966_v19  ;;  %v970_v30 = vadd.f32 %v969_v25, %v4406_v36  ;;  %v971_v31 = vpop.f32.mrb[11].mxu1  ;;  %3740 = vtanh.f32 %v1019_v47 }
 0x279   : > { %v3735_v34 = vpop.eup %3734  ;;  %v1041_v38 = vadd.f32 %v1040_v17, %v968_v24  ;;  %v972_v39 = vadd.f32 %v971_v31, %v4409_v37 }
 0x27a   : > { %3742 = vrcp.f32 %v1089_v27  ;;  %v1090_v40 = vadd.f32 1.0, %v3735_v34  ;;  %v1043_v41 = vadd.f32 %v1042_v22, %v970_v30  ;;  %v3572_v27 = vld [vmem:[#allocation7 + $0x180] ss:$8 sps:$4 sm:$0xff]   ;;  %v3577_v34 = vld [vmem:[#allocation7 + $0x194] ss:$8 sps:$4 sm:$0xff]  }
 0x27b   : > { %3744 = vtanh.f32 %v1023_v52  ;;  %v2974_v42 = vmul.f32 -1.442695, %v1041_v38  ;;  %v1045_v43 = vadd.f32 %v1044_v26, %v972_v39 }
 0x27c   : > { %3746 = vrcp.f32 %v1090_v40  ;;  %v1048_v44 = vpop.f32.mrb[20].mxu0  ;;  %v3575_v40 = vld [vmem:[#allocation7 + $0x190] ss:$8 sps:$4 sm:$0xff]  }
 0x27d   : > { %3748 = vpow2.f32 %v2974_v42  ;;  %v2975_v45 = vmul.f32 -1.442695, %v1045_v43  ;;  %v975_v46 = vpop.f32.mrb[12].mxu1  ;;  %v1050_v48 = vpop.f32.mrb[21].mxu0  ;;  %v3580_v43 = vld [vmem:[#allocation7 + $0x1a4] ss:$8 sps:$4 sm:$0xff]  }
 0x27e   : > { %v976_v49 = vadd.f32 %v975_v46, %v4406_v36  ;;  %v977_v50 = vpop.f32.mrb[13].mxu1  ;;  %v1052_v51 = vpop.f32.mrb[22].mxu0  ;;  %v3578_v46 = vld [vmem:[#allocation7 + $0x1a0] ss:$8 sps:$4 sm:$0xff]  }
 0x27f   : > { %v3737_v47 = vpop.eup %3736  ;;  %3750 = vpow2.f32 %v2975_v45  ;;  %v978_v53 = vadd.f32 %v977_v50, %v4409_v37  ;;  %v979_v54 = vpop.f32.mrb[14].mxu1 }
 0x280   : > { %v1054_v55 = vpop.f32.mrb[23].mxu0  ;;  %v1091_v56 = vadd.f32 1.0, %v3737_v47  ;;  %v1049_v52 = vadd.f32 %v1048_v44, %v976_v49  ;;  %v980_v57 = vadd.f32 %v979_v54, %v4406_v36  ;;  %v981_v58 = vpop.f32.mrb[15].mxu1  ;;  %3752 = vtanh.f32 %v1029_v5  ;;  %v3583_v49 = vld [vmem:[#allocation7 + $0x1b4] ss:$8 sps:$4 sm:$0xff]  }
 0x281   : > { %v3739_v59 = vpop.eup %3738  ;;  %v1051_v61 = vadd.f32 %v1050_v48, %v978_v53  ;;  %v982_v62 = vadd.f32 %v981_v58, %v4409_v37  ;;  %v3581_v47 = vld [vmem:[#allocation7 + $0x1b0] ss:$8 sps:$4 sm:$0xff]  }
 0x282   : > { %3754 = vrcp.f32 %v1091_v56  ;;  %v1092_v63 = vadd.f32 1.0, %v3739_v59  ;;  %v1053_v2 = vadd.f32 %v1052_v51, %v980_v57  ;;  %v3741_v4 = vpop.eup %3740  ;;  %v3584_v57 = vld [vmem:[#allocation7 + $0x1c0] ss:$8 sps:$4 sm:$0xff]   ;;  %v3589_v59 = vld [vmem:[#allocation7 + $0x1d4] ss:$8 sps:$4 sm:$0xff]  }
 0x283   : > { %3756 = vtanh.f32 %v1033_v11  ;;  %v2976_v7 = vmul.f32 -1.442695, %v1051_v61  ;;  %v1055_v8 = vadd.f32 %v1054_v55, %v982_v62  ;;  %v3586_v55 = vld [vmem:[#allocation7 + $0x1c4] ss:$8 sps:$4 sm:$0xff]   ;;  %v3587_v61 = vld [vmem:[#allocation7 + $0x1d0] ss:$8 sps:$4 sm:$0xff]  }
 0x284   : > { %v3743_v9 = vpop.eup %3742  ;;  %3758 = vrcp.f32 %v1092_v63  ;;  %v3592_v62 = vld [vmem:[#allocation7 + $0x1e4] ss:$8 sps:$4 sm:$0xff]   ;;  %v3590_v63 = vld [vmem:[#allocation7 + $0x1e0] ss:$8 sps:$4 sm:$0xff]  }
 0x285   : > { %v3745_v10 = vpop.eup %3744  ;;  %3760 = vpow2.f32 %v2976_v7  ;;  %v2977_v12 = vmul.f32 -1.442695, %v1055_v8  ;;  %v1113_v13 = vmul.f32 %v3743_v9, %v3741_v4  ;;  %v3593_v4 = vld [vmem:[#allocation7 + $0x1f0] ss:$8 sps:$4 sm:$0xff]   ;;  %v3598_v7 = vld [vmem:[#allocation7 + $0x204] ss:$8 sps:$4 sm:$0xff]  }
 0x286   : > { %v3747_v36 = vpop.eup %3746  ;;  %v3596_v8 = vld [vmem:[#allocation7 + $0x200] ss:$8 sps:$4 sm:$0xff]   ;;  %v3601_v9 = vld [vmem:[#allocation7 + $0x214] ss:$8 sps:$4 sm:$0xff]  }
 0x287   : > { %v3749_v14 = vpop.eup %3748  ;;  %3762 = vpow2.f32 %v2977_v12  ;;  %v1114_v5 = vmul.f32 %v3747_v36, %v3745_v10  ;;  %v3599_v10 = vld [vmem:[#allocation7 + $0x210] ss:$8 sps:$4 sm:$0xff]   ;;  %v3604_v12 = vld [vmem:[#allocation7 + $0x224] ss:$8 sps:$4 sm:$0xff]   ;;  %v3607_v36 = vld [vmem:[#allocation7 + $0x234] ss:$8 sps:$4 sm:$0xff]  }
 0x288   : > { %v1093_v15 = vadd.f32 1.0, %v3749_v14  ;;  %3764 = vtanh.f32 %v1039_v28  ;;  %v3605_v14 = vld [vmem:[#allocation7 + $0x230] ss:$8 sps:$4 sm:$0xff]  }
 0x289   : > { %v3751_v16 = vpop.eup %3750  ;;  %v1121_v37 = vpack.c.bf16 %v1114_v5, %v1113_v13  ;;  %v3602_v13 = vld [vmem:[#allocation7 + $0x220] ss:$8 sps:$4 sm:$0xff]   ;;  %v3610_v5 = vld [vmem:[#allocation7 + $0x244] ss:$8 sps:$4 sm:$0xff]  }
 0x28a   : > { %3766 = vrcp.f32 %v1093_v15  ;;  %v1094_v17 = vadd.f32 1.0, %v3751_v16  ;;  %v3753_v19 = vpop.eup %3752  ;;  %v3608_v15 = vld [vmem:[#allocation7 + $0x240] ss:$8 sps:$4 sm:$0xff]   ;;  %v3613_v16 = vld [vmem:[#allocation7 + $0x254] ss:$8 sps:$4 sm:$0xff]  }
 0x28b   : > { %3768 = vtanh.f32 %v1043_v41  ;;  %3227 = vmatprep.mubr.bf16.mxu0 %v1121_v37  ;;  %v3611_v37 = vld [vmem:[#allocation7 + $0x250] ss:$8 sps:$4 sm:$0xff]  }
 0x28c   : > { %v3755_v11 = vpop.eup %3754  ;;  %3770 = vrcp.f32 %v1094_v17  ;;  %v3616_v17 = vld [vmem:[#allocation7 + $0x264] ss:$8 sps:$4 sm:$0xff]  }
 0x28d   : > { %v3757_v20 = vpop.eup %3756  ;;  %v1115_v22 = vmul.f32 %v3755_v11, %v3753_v19  ;;  %3772 = vtanh.f32 %v1049_v52  ;;  %v3614_v19 = vld [vmem:[#allocation7 + $0x260] ss:$8 sps:$4 sm:$0xff]   ;;  %v3619_v11 = vld [vmem:[#allocation7 + $0x274] ss:$8 sps:$4 sm:$0xff]  }
 0x28e   : > { %v3759_v23 = vpop.eup %3758 }
 0x28f   : > { %v3761_v24 = vpop.eup %3760  ;;  %v1116_v25 = vmul.f32 %v3759_v23, %v3757_v20  ;;  %v3617_v20 = vld [vmem:[#allocation7 + $0x270] ss:$8 sps:$4 sm:$0xff]   ;;  %v2978_v23 = vld [vmem:[%s4694_s6] ss:$0 sm:$0xff] }
 0x290   : > { %v1095_v26 = vadd.f32 1.0, %v3761_v24 }
 0x291   : > { %v3763_v30 = vpop.eup %3762  ;;  %v1122_v31 = vpack.c.bf16 %v1116_v25, %v1115_v22  ;;  %v3622_v22 = vld [vmem:[#allocation7 + $0x284] ss:$8 sps:$4 sm:$0xff]  }
 0x292   : > { %3774 = vrcp.f32 %v1095_v26  ;;  %v1096_v28 = vadd.f32 1.0, %v3763_v30  ;;  %v3765_v38 = vpop.eup %3764 }
 0x293   : > { %3776 = vtanh.f32 %v1053_v2  ;;  %3228 = vmatmul.mubr.bf16.vlgmr.msra.gmra.mrb[24].mxu0 %v1122_v31  ;;  %v3595_v2 = vld [vmem:[#allocation7 + $0x1f4] ss:$8 sps:$4 sm:$0xff]  }
 0x294   : > { %v3767_v39 = vpop.eup %3766  ;;  %3778 = vrcp.f32 %v1096_v28  ;;  %1672 = vmatpush1.bf16.msra.mxu0 %v3572_v27 }
 0x295   : > { %v3769_v41 = vpop.eup %3768  ;;  %v1117_v42 = vmul.f32 %v3767_v39, %v3765_v38  ;;  %1673 = vmatprep.subr.bf16.mxu0 %v3577_v34 }
 0x296   : > { %v3771_v44 = vpop.eup %3770 }
 0x297   : > { %v1118_v45 = vmul.f32 %v3771_v44, %v3769_v41  ;;  %v3773_v50 = vpop.eup %3772 }
 0x298   : > { %1674 = vmatpush1.bf16.msra.mxu0 %v3575_v40 }
 0x299   : > { %v1123_v48 = vpack.c.bf16 %v1118_v45, %v1117_v42  ;;  %1675 = vmatprep.subr.bf16.mxu0 %v3580_v43 }
 0x29b   : > { %3231 = vmatprep.mubr.bf16.mxu0 %v1123_v48 }
 0x29c   : > { %v3775_v51 = vpop.eup %3774  ;;  %1676 = vmatpush1.bf16.msra.mxu0 %v3578_v46 }
 0x29d   : > { %v3777_v53 = vpop.eup %3776  ;;  %v1119_v54 = vmul.f32 %v3775_v51, %v3773_v50  ;;  %1677 = vmatprep.subr.bf16.mxu0 %v3583_v49 }
 0x29e   : > { %v3779_v56 = vpop.eup %3778 }
 0x29f   : > { %v1120_v52 = vmul.f32 %v3779_v56, %v3777_v53 }
 0x2a0   : > { %1678 = vmatpush1.bf16.msra.mxu0 %v3581_v47 }
 0x2a1   : > { %v1124_v58 = vpack.c.bf16 %v1120_v52, %v1119_v54  ;;  %1679 = vmatprep.subr.bf16.mxu0 %v3586_v55 }
 0x2a3   : > { %3232 = vmatmul.mubr.bf16.gmra.mrb[28].mxu0 %v1124_v58 }
 0x2a4   : > { %1680 = vmatpush1.bf16.msra.mxu0 %v3584_v57 }
 0x2a5   : > { %1681 = vmatprep.subr.bf16.mxu0 %v3589_v59 }
 0x2a8   : > { %1682 = vmatpush1.bf16.msra.mxu0 %v3587_v61 }
 0x2a9   : > { %1683 = vmatprep.subr.bf16.mxu0 %v3592_v62  ;;  %v3620_v62 = vld [vmem:[#allocation7 + $0x280] ss:$8 sps:$4 sm:$0xff]  }
 0x2ac   : > { %1684 = vmatpush1.bf16.msra.mxu0 %v3590_v63 }
 0x2ad   : > { %1685 = vmatprep.subr.bf16.mxu0 %v3595_v2 }
 0x2b0   : > { %1686 = vmatpush1.bf16.msra.mxu0 %v3593_v4  ;;  %v3625_v4 = vld [vmem:[#allocation7 + $0x294] ss:$8 sps:$4 sm:$0xff]  }
 0x2b1   : > { %1687 = vmatprep.subr.bf16.mxu0 %v3598_v7 }
 0x2b4   : > { %1688 = vmatpush1.bf16.msra.mxu0 %v3596_v8 }
 0x2b5   : > { %1689 = vmatprep.subr.bf16.mxu0 %v3601_v9  ;;  %v3623_v9 = vld [vmem:[#allocation7 + $0x290] ss:$8 sps:$4 sm:$0xff]  }
 0x2b8   : > { %1690 = vmatpush1.bf16.msra.mxu0 %v3599_v10 }
 0x2b9   : > { %1691 = vmatprep.subr.bf16.mxu0 %v3604_v12 }
 0x2bc   : > { %1692 = vmatpush1.bf16.msra.mxu0 %v3602_v13  ;;  %v3628_v13 = vld [vmem:[#allocation7 + $0x2a4] ss:$8 sps:$4 sm:$0xff]  }
 0x2bd   : > { %1693 = vmatprep.subr.bf16.mxu0 %v3607_v36 }
 0x2c0   : > { %1694 = vmatpush1.bf16.msra.mxu0 %v3605_v14 }
 0x2c1   : > { %1695 = vmatprep.subr.bf16.mxu0 %v3610_v5 }
 0x2c4   : > { %1696 = vmatpush1.bf16.msra.mxu0 %v3608_v15 }
 0x2c5   : > { %1697 = vmatprep.subr.bf16.mxu0 %v3613_v16 }
 0x2c8   : > { %1698 = vmatpush1.bf16.msra.mxu0 %v3611_v37 }
 0x2c9   : > { %1699 = vmatprep.subr.bf16.mxu0 %v3616_v17  ;;  %v3626_v17 = vld [vmem:[#allocation7 + $0x2a0] ss:$8 sps:$4 sm:$0xff]  }
 0x2cc   : > { %1700 = vmatpush1.bf16.msra.mxu0 %v3614_v19 }
 0x2cd   : > { %1701 = vmatprep.subr.bf16.mxu0 %v3619_v11 }
 0x2d0   : > { %1702 = vmatpush1.bf16.msra.mxu0 %v3617_v20  ;;  %v3631_v20 = vld [vmem:[#allocation7 + $0x2b4] ss:$8 sps:$4 sm:$0xff]  }
 0x2d1   : > { %1744 = vmatprep.subr.bf16.mxu0 %v3622_v22 }
 0x366   : > { %v3229_v24 = vpop.f32.mrb[24].mxu0 }
 0x367   : > { %v4430_v25 = vadd.f32 %v3229_v24, %v2978_v23  ;;  %v1230_v26 = vpop.f32.mrb[25].mxu0 }
 0x368   : > { %v4432_v27 = vadd.f32 %v2978_v23, %v1230_v26  ;;  %v3230_v30 = vpop.f32.mrb[26].mxu0 }
 0x369   : > { %v4434_v31 = vadd.f32 %v3230_v30, %v2978_v23  ;;  %v1233_v34 = vpop.f32.mrb[27].mxu0  ;;  %v1281_v39 = vrot.slane %v4430_v25, 6 }
 0x36a   : > { %v1278_v28 = vrot.slane %v4432_v27, 6  ;;  %v4437_v38 = vadd.f32 %v2978_v23, %v1233_v34 }
 0x36b   : > { %v1283_v40 = vrot.slane %v4434_v31, 6 }
 0x36c   : > { %v1302_v41 = vsel %vm1277_vm6, 0.0, %v1278_v28  ;;  %v1279_v42 = vrot.slane %v4437_v38, 6 }
 0x36d   : > { %v1306_v43 = vrot.slane %v1302_v41, 2  ;;  %v1332_v44 = vrot.slane %v1302_v41, 4  ;;  %v4444_v45 = vsel %vm1277_vm6, %v1281_v39, %v1283_v40 }
 0x36e   : > { %v1311_v46 = vrot.slane %v4444_v45, 2  ;;  %v1337_v48 = vrot.slane %v4444_v45, 4  ;;  %v1280_v49 = vsel %vm1277_vm6, %v1278_v28, %v1279_v42  ;;  %v4450_v50 = vsel %vm1277_vm6, %v1279_v42, %v1281_v39 }
 0x36f   : > { %v1307_v51 = vrot.slane %v1280_v49, 2  ;;  %v1309_v47 = vrot.slane %v4450_v50, 2  ;;  %v1333_v53 = vrot.slane %v1280_v49, 4  ;;  %v1335_v54 = vrot.slane %v4450_v50, 4 }
 0x370   : > { %v3038_v55 = vpack.c.bf16 %v1280_v49, %v1278_v28  ;;  %v1360_v56 = vpack.c.bf16 %v4444_v45, %v4450_v50  ;;  %v3641_v45 = vld [vmem:[#allocation7 + $0x2f0] ss:$8 sps:$4 sm:$0xff]   ;;  %v3644_v50 = vld [vmem:[#allocation8 + $0x40] sm:$0xff]  }
 0x371   : > { %v1308_v52 = vsel %vm573_vm2, %v1306_v43, %v1307_v51  ;;  %v1310_v57 = vsel %vm573_vm2, %v1307_v51, %v1309_v47  ;;  %v1312_v58 = vsel %vm573_vm2, %v1309_v47, %v1311_v46  ;;  %v4461_v59 = vsel %vm1331_vm7, %v1332_v44, %v1333_v53  ;;  %v3629_v43 = vld [vmem:[#allocation7 + $0x2b0] ss:$8 sps:$4 sm:$0xff]   ;;  %v3634_v51 = vld [vmem:[#allocation7 + $0x2c4] ss:$8 sps:$4 sm:$0xff]   ;;  %3235 = vmatprep.subr.bf16.mxu1 %v3644_v50 }
 0x372   : > { %v1358_v61 = vpack.c.bf16 %v1310_v57, %v1308_v52  ;;  %v4465_v63 = vsel %vm1331_vm7, %v1333_v53, %v1335_v54  ;;  %v4468_v2 = vsel %vm1331_vm7, %v1335_v54, %v1337_v48  ;;  %3236 = vmatpush3.bf16.msra.mxu1 %v3644_v50 }
 0x373   : > { %v1359_v7 = vpack.c.bf16 %v4465_v63, %v4461_v59  ;;  %v3647_v59 = vld [vmem:[#allocation8 + $0x58] sm:$0xff]   ;;  %v3648_v63 = vld [vmem:[#allocation8 + $0x60] sm:$0xff]  }
 0x374   : > { %1703 = vmatprep.mubr.bf16.mxu0 %v1358_v61 }
 0x375   : > { %3039 = vmatmul.mubr.msk.bf16.vlgmr.msra.gmra.mrb[32].mxu0 %vm3037_vm9, %v3038_v55 }
 0x376   : > { %v3233_v8 = vpop.f32.mrb[28].mxu0  ;;  %1745 = vmatpush1.bf16.msra.mxu0 %v3620_v62 }
 0x377   : > { %v4472_v10 = vadd.f32 %v3233_v8, %v2978_v23  ;;  %v1246_v12 = vpop.f32.mrb[29].mxu0  ;;  %1746 = vmatprep.subr.bf16.mxu0 %v3625_v4 }
 0x378   : > { %v4474_v36 = vadd.f32 %v2978_v23, %v1246_v12  ;;  %v3234_v14 = vpop.f32.mrb[30].mxu0  ;;  %v3632_v12 = vld [vmem:[#allocation7 + $0x2c0] ss:$8 sps:$4 sm:$0xff]  }
 0x379   : > { %v4476_v5 = vadd.f32 %v3234_v14, %v2978_v23  ;;  %v1249_v15 = vpop.f32.mrb[31].mxu0  ;;  %v1289_v19 = vrot.slane %v4472_v10, 6 }
 0x37a   : > { %v1285_v16 = vrot.slane %v4474_v36, 6  ;;  %v4479_v37 = vadd.f32 %v2978_v23, %v1249_v15  ;;  %1747 = vmatpush1.bf16.msra.mxu0 %v3623_v9  ;;  %v3637_v15 = vld [vmem:[#allocation7 + $0x2d4] ss:$8 sps:$4 sm:$0xff]  }
 0x37b   : > { %v1291_v11 = vrot.slane %v4476_v5, 6  ;;  %1748 = vmatprep.subr.bf16.mxu0 %v3628_v13 }
 0x37c   : > { %v1286_v22 = vsel %vm1277_vm6, %v1283_v40, %v1285_v16  ;;  %v1287_v24 = vrot.slane %v4479_v37, 6 }
 0x37d   : > { %v1313_v26 = vrot.slane %v1286_v22, 2  ;;  %v1339_v30 = vrot.slane %v1286_v22, 4  ;;  %v1292_v34 = vsel %vm1277_vm6, %v1289_v19, %v1291_v11  ;;  %v1303_v28 = vsel %vm1277_vm6, %v1291_v11, 0.0 }
 0x37e   : > { %v1319_v23 = vrot.slane %v1292_v34, 2  ;;  %v1321_v39 = vrot.slane %v1303_v28, 2  ;;  %v1345_v41 = vrot.slane %v1292_v34, 4  ;;  %v1347_v42 = vrot.slane %v1303_v28, 4  ;;  %1749 = vmatpush1.bf16.msra.mxu0 %v3626_v17  ;;  %v3651_v28 = vld [vmem:[#allocation8 + $0x78] sm:$0xff]  }
 0x37f   : > { %v1288_v44 = vsel %vm1277_vm6, %v1285_v16, %v1287_v24  ;;  %v1290_v49 = vsel %vm1277_vm6, %v1287_v24, %v1289_v19  ;;  %v1314_v40 = vsel %vm573_vm2, %v1311_v46, %v1313_v26  ;;  %1750 = vmatprep.subr.bf16.mxu0 %v3631_v20  ;;  %v1340_v47 = vsel %vm1331_vm7, %v1337_v48, %v1339_v30  ;;  %v3635_v20 = vld [vmem:[#allocation7 + $0x2d0] ss:$8 sps:$4 sm:$0xff]   ;;  %v3638_v24 = vld [vmem:[#allocation7 + $0x2e0] ss:$8 sps:$4 sm:$0xff]  }
 0x380   : > { %v1315_v53 = vrot.slane %v1288_v44, 2  ;;  %v1317_v54 = vrot.slane %v1290_v49, 2  ;;  %v1341_v55 = vrot.slane %v1288_v44, 4  ;;  %v1343_v52 = vrot.slane %v1290_v49, 4 }
 0x381   : > { %v1361_v57 = vpack.c.bf16 %v1314_v40, %v1312_v58  ;;  %v1363_v61 = vpack.c.bf16 %v1288_v44, %v1286_v22  ;;  %v1322_v62 = vsel %vm573_vm2, %v1319_v23, %v1321_v39  ;;  %v1366_v4 = vpack.c.bf16 %v1292_v34, %v1290_v49  ;;  %v3640_v22 = vld [vmem:[#allocation7 + $0x2e4] ss:$8 sps:$4 sm:$0xff]   ;;  %v3650_v34 = vld [vmem:[#allocation8 + $0x70] sm:$0xff]   ;;  %v2987_v39 = vld [vmem:[%s4692_s4 + $0x2] sm:$0x3] }
 0x382   : > { %v1316_v8 = vsel %vm573_vm2, %v1313_v26, %v1315_v53  ;;  %v1318_v9 = vsel %vm573_vm2, %v1315_v53, %v1317_v54  ;;  %1751 = vmatpush1.bf16.msra.mxu0 %v3629_v43  ;;  %v1320_v46 = vsel %vm573_vm2, %v1317_v54, %v1319_v23  ;;  %v1362_v13 = vpack.c.bf16 %v1340_v47, %v4468_v2  ;;  %v3643_v26 = vld [vmem:[#allocation7 + $0x2f4] ss:$8 sps:$4 sm:$0xff]   ;;  %v3654_v23 = vld [vmem:[#allocation7 + $0x304] ss:$8 sps:$4 sm:$0xff]  }
 0x383   : > { %1713 = vmatprep.mubr.bf16.mxu0 %v1361_v57  ;;  %v1364_v48 = vpack.c.bf16 %v1318_v9, %v1316_v8  ;;  %1752 = vmatprep.subr.bf16.mxu0 %v3634_v51  ;;  %v1367_v14 = vpack.c.bf16 %v1322_v62, %v1320_v46  ;;  %v1342_v58 = vsel %vm1331_vm7, %v1339_v30, %v1341_v55  ;;  %v3646_v30 = vld [vmem:[#allocation8 + $0x50] sm:$0xff]  }
 0x384   : > { %1714 = vmatmul.mubr.bf16.gmra.mrb[36].mxu0 %v1360_v56  ;;  %v1344_v16 = vsel %vm1331_vm7, %v1341_v55, %v1343_v52  ;;  %v1346_v17 = vsel %vm1331_vm7, %v1343_v52, %v1345_v41  ;;  %v1348_v19 = vsel %vm1331_vm7, %v1345_v41, %v1347_v42  ;;  %v3645_v56 = vld [vmem:[#allocation8 + $0x48] sm:$0xff]   ;;  %v1428_v41 = vrot.slane %v2987_v39, %v4403_v35 }
 0x385   : > { %1723 = vmatprep.mubr.bf16.mxu0 %v1364_v48  ;;  %v1365_v11 = vpack.c.bf16 %v1344_v16, %v1342_v58  ;;  %v1368_v2 = vpack.c.bf16 %v1348_v19, %v1346_v17  ;;  %3237 = vmatprep.subr.bf16.mxu1 %v3645_v56  ;;  %v4515_v52 = vrot.slane %v2987_v39, %v4398_v32 }
 0x386   : > { %1753 = vmatpush1.bf16.msra.mxu0 %v3632_v12  ;;  %3238 = vmatpush3.bf16.msra.mxu1 %v3645_v56 }
 0x387   : > { %1754 = vmatprep.subr.bf16.mxu0 %v3637_v15  ;;  %3239 = vmatprep.subr.bf16.mxu1 %v3646_v30 }
 0x38a   : > { %1755 = vmatpush1.bf16.msra.mxu0 %v3635_v20  ;;  %3240 = vmatpush3.bf16.msra.mxu1 %v3646_v30 }
 0x38b   : > { %1756 = vmatprep.subr.bf16.mxu0 %v3640_v22  ;;  %3241 = vmatprep.subr.bf16.mxu1 %v3647_v59 }
 0x38c   : > { %1724 = vmatmul.mubr.bf16.gmra.mrb[40].mxu0 %v1363_v61 }
 0x38d   : > { %1733 = vmatprep.mubr.bf16.mxu0 %v1367_v14 }
 0x38e   : > { %1757 = vmatpush1.bf16.msra.mxu0 %v3638_v24  ;;  %3242 = vmatpush3.bf16.msra.mxu1 %v3647_v59 }
 0x38f   : > { %1758 = vmatprep.subr.bf16.mxu0 %v3643_v26  ;;  %3243 = vmatprep.subr.bf16.mxu1 %v3648_v63 }
 0x392   : > { %1759 = vmatpush1.bf16.msra.mxu0 %v3641_v45  ;;  %3244 = vmatpush3.bf16.msra.mxu1 %v3648_v63 }
 0x394   : > { %1734 = vmatmul.mubr.bf16.gmra.mrb[44].mxu0 %v1366_v4 }
 0x395   : > { %1776 = vmatprep.mubr.bf16.mxu0 %v4074_v60 }
 0x39c   : > { %1777 = vmatmul.mubr.bf16.vlgmr.msra.gmra.mrb[32].mxu0 %v1359_v7  ;;  %v3649_v7 = vld [vmem:[#allocation8 + $0x68] sm:$0xff]  }
 0x39d   : > { %1786 = vmatprep.mubr.bf16.mxu0 %v4074_v60  ;;  %3245 = vmatprep.subr.bf16.mxu1 %v3649_v7 }
 0x39e   : > { %3246 = vmatpush3.bf16.msra.mxu1 %v3649_v7 }
 0x39f   : > { %3247 = vmatprep.subr.bf16.mxu1 %v3650_v34 }
 0x3a2   : > { %3248 = vmatpush3.bf16.msra.mxu1 %v3650_v34 }
 0x3a3   : > { %3249 = vmatprep.subr.bf16.mxu1 %v3651_v28 }
 0x3a4   : > { %1787 = vmatmul.mubr.bf16.gmra.mrb[36].mxu0 %v1362_v13 }
 0x3a5   : > { %1796 = vmatprep.mubr.bf16.mxu0 %v4074_v60 }
 0x3a6   : > { %3250 = vmatpush3.bf16.msra.mxu1 %v3651_v28 }
 0x3a7   : > { %2406 = vmatprep.subr.bf16.mxu1 %v3654_v23 }
 0x3ac   : > { %1797 = vmatmul.mubr.bf16.gmra.mrb[40].mxu0 %v1365_v11 }
 0x3ad   : > { %1806 = vmatprep.mubr.bf16.mxu0 %v4074_v60 }
 0x3b4   : > { %1807 = vmatmul.mubr.bf16.gmra.mrb[44].mxu0 %v1368_v2 }
 0x46f   : > { %v1778_v42 = vpop.f32.mrb[32].mxu0 }
 0x470   : > { %v1780_v43 = vpop.f32.mrb[33].mxu0  ;;  %v3331_v9 = vadd.f32 %v1778_v42, %v4515_v52 }
 0x471   : > { %v3332_v44 = vadd.f32 %v1780_v43, %v1428_v41  ;;  %v1782_v49 = vpop.f32.mrb[34].mxu0 }
 0x472   : > { %v1784_v40 = vpop.f32.mrb[35].mxu0  ;;  %v3333_v13 = vadd.f32 %v1782_v49, %v4515_v52 }
 0x473   : > { %v3040_v51 = vmul.f32 -1.442695, %v3332_v44  ;;  %v3334_v47 = vadd.f32 %v1784_v40, %v1428_v41 }
 0x475   : > { %3780 = vpow2.f32 %v3040_v51  ;;  %v3041_v53 = vmul.f32 -1.442695, %v3334_v47 }
 0x477   : > { %3782 = vpow2.f32 %v3041_v53  ;;  %v1788_v54 = vpop.f32.mrb[36].mxu0 }
 0x478   : > { %v1790_v55 = vpop.f32.mrb[37].mxu0  ;;  %v3335_v22 = vadd.f32 %v1788_v54, %v4515_v52 }
 0x479   : > { %v3336_v57 = vadd.f32 %v1790_v55, %v1428_v41  ;;  %v1792_v61 = vpop.f32.mrb[38].mxu0 }
 0x47a   : > { %v1794_v62 = vpop.f32.mrb[39].mxu0  ;;  %v3337_v45 = vadd.f32 %v1792_v61, %v4515_v52 }
 0x47b   : > { %v3042_v4 = vmul.f32 -1.442695, %v3336_v57  ;;  %v3338_v8 = vadd.f32 %v1794_v62, %v1428_v41 }
 0x47d   : > { %3784 = vpow2.f32 %v3042_v4  ;;  %v3043_v12 = vmul.f32 -1.442695, %v3338_v8 }
 0x47f   : > { %v3781_v46 = vpop.eup %3780  ;;  %3786 = vpow2.f32 %v3043_v12  ;;  %v1798_v48 = vpop.f32.mrb[40].mxu0 }
 0x480   : > { %v1849_v14 = vadd.f32 1.0, %v3781_v46  ;;  %v1800_v15 = vpop.f32.mrb[41].mxu0  ;;  %3788 = vtanh.f32 %v3331_v9  ;;  %v3339_v49 = vadd.f32 %v1798_v48, %v4515_v52 }
 0x481   : > { %v3783_v58 = vpop.eup %3782  ;;  %v3340_v16 = vadd.f32 %v1800_v15, %v1428_v41  ;;  %v1802_v17 = vpop.f32.mrb[42].mxu0 }
 0x482   : > { %3790 = vrcp.f32 %v1849_v14  ;;  %v1850_v19 = vadd.f32 1.0, %v3783_v58  ;;  %v1804_v11 = vpop.f32.mrb[43].mxu0  ;;  %v3341_v54 = vadd.f32 %v1802_v17, %v4515_v52 }
 0x483   : > { %3792 = vtanh.f32 %v3333_v13  ;;  %v3044_v2 = vmul.f32 -1.442695, %v3340_v16  ;;  %v3342_v20 = vadd.f32 %v1804_v11, %v1428_v41  ;;  %v3652_v16 = vld [vmem:[#allocation7 + $0x300] ss:$8 sps:$4 sm:$0xff]   ;;  %v3657_v11 = vld [vmem:[#allocation7 + $0x314] ss:$8 sps:$4 sm:$0xff]  }
 0x484   : > { %3794 = vrcp.f32 %v1850_v19 }
 0x485   : > { %3796 = vpow2.f32 %v3044_v2  ;;  %v3045_v24 = vmul.f32 -1.442695, %v3342_v20 }
 0x487   : > { %v3785_v26 = vpop.eup %3784  ;;  %3798 = vpow2.f32 %v3045_v24  ;;  %v1808_v50 = vpop.f32.mrb[44].mxu0  ;;  %v3655_v24 = vld [vmem:[#allocation7 + $0x310] ss:$8 sps:$4 sm:$0xff]  }
 0x488   : > { %v1851_v56 = vadd.f32 1.0, %v3785_v26  ;;  %v1810_v30 = vpop.f32.mrb[45].mxu0  ;;  %3800 = vtanh.f32 %v3335_v22  ;;  %v3343_v12 = vadd.f32 %v1808_v50, %v4515_v52 }
 0x489   : > { %v3787_v59 = vpop.eup %3786  ;;  %v3344_v63 = vadd.f32 %v1810_v30, %v1428_v41  ;;  %v1812_v7 = vpop.f32.mrb[46].mxu0  ;;  %v3658_v30 = vld [vmem:[#allocation7 + $0x320] ss:$8 sps:$4 sm:$0xff]  }
 0x48a   : > { %3802 = vrcp.f32 %v1851_v56  ;;  %v1852_v34 = vadd.f32 1.0, %v3787_v59  ;;  %v1814_v28 = vpop.f32.mrb[47].mxu0  ;;  %v3789_v23 = vpop.eup %3788  ;;  %v3345_v14 = vadd.f32 %v1812_v7, %v4515_v52  ;;  %v3660_v52 = vld [vmem:[#allocation7 + $0x324] ss:$8 sps:$4 sm:$0xff]  }
 0x48b   : > { %3804 = vtanh.f32 %v3337_v45  ;;  %v3046_v39 = vmul.f32 -1.442695, %v3344_v63  ;;  %v3346_v42 = vadd.f32 %v1814_v28, %v1428_v41  ;;  %v3663_v63 = vld [vmem:[#allocation7 + $0x334] ss:$8 sps:$4 sm:$0xff]   ;;  %v3661_v28 = vld [vmem:[#allocation7 + $0x330] ss:$8 sps:$4 sm:$0xff]  }
 0x48c   : > { %v3791_v43 = vpop.eup %3790  ;;  %3806 = vrcp.f32 %v1852_v34 }
 0x48d   : > { %v3793_v44 = vpop.eup %3792  ;;  %3808 = vpow2.f32 %v3046_v39  ;;  %v3047_v40 = vmul.f32 -1.442695, %v3346_v42  ;;  %v1873_v51 = vmul.f32 %v3791_v43, %v3789_v23  ;;  %v3666_v42 = vld [vmem:[#allocation7 + $0x344] ss:$8 sps:$4 sm:$0xff]  }
 0x48e   : > { %v3795_v47 = vpop.eup %3794 }
 0x48f   : > { %v3797_v53 = vpop.eup %3796  ;;  %3810 = vpow2.f32 %v3047_v40  ;;  %v1874_v55 = vmul.f32 %v3795_v47, %v3793_v44  ;;  %v3667_v47 = vld [vmem:[#allocation7 + $0x350] ss:$8 sps:$4 sm:$0xff]  }
 0x490   : > { %v1853_v57 = vadd.f32 1.0, %v3797_v53  ;;  %3812 = vtanh.f32 %v3339_v49  ;;  %v3664_v49 = vld [vmem:[#allocation7 + $0x340] ss:$8 sps:$4 sm:$0xff]   ;;  %v3672_v53 = vld [vmem:[#allocation7 + $0x364] ss:$8 sps:$4 sm:$0xff]  }
 0x491   : > { %v3799_v61 = vpop.eup %3798  ;;  %v1881_v62 = vpack.c.bf16 %v1874_v55, %v1873_v51  ;;  %v3669_v51 = vld [vmem:[#allocation7 + $0x354] ss:$8 sps:$4 sm:$0xff]  }
 0x492   : > { %3814 = vrcp.f32 %v1853_v57  ;;  %v1854_v41 = vadd.f32 1.0, %v3799_v61  ;;  %v3801_v4 = vpop.eup %3800  ;;  %v3675_v55 = vld [vmem:[#allocation7 + $0x374] ss:$8 sps:$4 sm:$0xff]   ;;  %v3673_v57 = vld [vmem:[#allocation7 + $0x370] ss:$8 sps:$4 sm:$0xff]  }
 0x493   : > { %3816 = vtanh.f32 %v3341_v54  ;;  %3251 = vmatprep.mubr.bf16.mxu1 %v1881_v62  ;;  %v3670_v54 = vld [vmem:[#allocation7 + $0x360] ss:$8 sps:$4 sm:$0xff]   ;;  %v3678_v61 = vld [vmem:[#allocation7 + $0x384] ss:$8 sps:$4 sm:$0xff]  }
 0x494   : > { %v3803_v8 = vpop.eup %3802  ;;  %3818 = vrcp.f32 %v1854_v41  ;;  %v3676_v62 = vld [vmem:[#allocation7 + $0x380] ss:$8 sps:$4 sm:$0xff]   ;;  %v3681_v41 = vld [vmem:[#allocation7 + $0x394] ss:$8 sps:$4 sm:$0xff]  }
 0x495   : > { %v3805_v9 = vpop.eup %3804  ;;  %v1875_v46 = vmul.f32 %v3803_v8, %v3801_v4  ;;  %3820 = vtanh.f32 %v3343_v12  ;;  %v3679_v4 = vld [vmem:[#allocation7 + $0x390] ss:$8 sps:$4 sm:$0xff]   ;;  %v3684_v8 = vld [vmem:[#allocation7 + $0x3a4] ss:$8 sps:$4 sm:$0xff]   ;;  %v3687_v12 = vld [vmem:[#allocation7 + $0x3b4] ss:$8 sps:$4 sm:$0xff]  }
 0x496   : > { %v3807_v13 = vpop.eup %3806 }
 0x497   : > { %v3809_v48 = vpop.eup %3808  ;;  %v1876_v15 = vmul.f32 %v3807_v13, %v3805_v9  ;;  %v3682_v9 = vld [vmem:[#allocation7 + $0x3a0] ss:$8 sps:$4 sm:$0xff]   ;;  %v3690_v13 = vld [vmem:[#allocation7 + $0x3c4] ss:$8 sps:$4 sm:$0xff]  }
 0x498   : > { %v1855_v58 = vadd.f32 1.0, %v3809_v48  ;;  %v3688_v48 = vld [vmem:[#allocation7 + $0x3c0] ss:$8 sps:$4 sm:$0xff]  }
 0x499   : > { %v3811_v17 = vpop.eup %3810  ;;  %v1882_v19 = vpack.c.bf16 %v1876_v15, %v1875_v46  ;;  %v3685_v46 = vld [vmem:[#allocation7 + $0x3b0] ss:$8 sps:$4 sm:$0xff]  }
 0x49a   : > { %3822 = vrcp.f32 %v1855_v58  ;;  %v1856_v2 = vadd.f32 1.0, %v3811_v17  ;;  %v3813_v20 = vpop.eup %3812  ;;  %v3691_v15 = vld [vmem:[#allocation7 + $0x3d0] ss:$8 sps:$4 sm:$0xff]   ;;  %v3696_v58 = vld [vmem:[#allocation7 + $0x3e4] ss:$8 sps:$4 sm:$0xff]  }
 0x49b   : > { %3824 = vtanh.f32 %v3345_v14  ;;  %3252 = vmatmul.mubr.bf16.vlgmr.msra.gmra.mrb[16].mxu1 %v1882_v19  ;;  %v3693_v14 = vld [vmem:[#allocation7 + $0x3d4] ss:$8 sps:$4 sm:$0xff]   ;;  %v3697_v19 = vld [vmem:[#allocation7 + $0x3f0] ss:$8 sps:$4 sm:$0xff]  }
 0x49c   : > { %v3815_v22 = vpop.eup %3814  ;;  %3826 = vrcp.f32 %v1856_v2  ;;  %2407 = vmatpush1.bf16.msra.mxu1 %v3652_v16  ;;  %v3694_v16 = vld [vmem:[#allocation7 + $0x3e0] ss:$8 sps:$4 sm:$0xff]   ;;  %v3699_v17 = vld [vmem:[#allocation7 + $0x3f4] ss:$8 sps:$4 sm:$0xff]  }
 0x49d   : > { %v3817_v26 = vpop.eup %3816  ;;  %v1877_v45 = vmul.f32 %v3815_v22, %v3813_v20  ;;  %2408 = vmatprep.subr.bf16.mxu1 %v3657_v11  ;;  %v3702_v11 = vld [vmem:[#allocation7 + $0x404] ss:$8 sps:$4 sm:$0xff]   ;;  %v3049_v2 = vld [vmem:[%s4694_s6 + $0x1] ss:$0 sm:$0xff]  ;;  %v1263_v22 = vadd.f32 %v4430_v25, %v4344_v0 }
 0x49e   : > { %v3819_v50 = vpop.eup %3818 }
 0x49f   : > { %v1878_v56 = vmul.f32 %v3819_v50, %v3817_v26  ;;  %v3821_v7 = vpop.eup %3820 }
 0x4a0   : > { %2409 = vmatpush1.bf16.msra.mxu1 %v3655_v24 }
 0x4a1   : > { %v1883_v59 = vpack.c.bf16 %v1878_v56, %v1877_v45  ;;  %2410 = vmatprep.subr.bf16.mxu1 %v3660_v52  ;;  %v1261_v45 = vadd.f32 %v4432_v27, %v4346_v1  ;;  %v1264_v56 = vadd.f32 %v4434_v31, %v4348_v3 }
 0x4a3   : > { %3255 = vmatprep.mubr.bf16.mxu1 %v1883_v59 }
 0x4a4   : > { %v3823_v34 = vpop.eup %3822  ;;  %2411 = vmatpush1.bf16.msra.mxu1 %v3658_v30 }
 0x4a5   : > { %v3825_v23 = vpop.eup %3824  ;;  %v1879_v39 = vmul.f32 %v3823_v34, %v3821_v7  ;;  %2412 = vmatprep.subr.bf16.mxu1 %v3663_v63  ;;  %v1262_v7 = vadd.f32 %v4437_v38, %v4351_v6 }
 0x4a6   : > { %v3827_v43 = vpop.eup %3826 }
 0x4a7   : > { %v1880_v44 = vmul.f32 %v3827_v43, %v3825_v23 }
 0x4a8   : > { %2413 = vmatpush1.bf16.msra.mxu1 %v3661_v28 }
 0x4a9   : > { %v1884_v40 = vpack.c.bf16 %v1880_v44, %v1879_v39  ;;  %2414 = vmatprep.subr.bf16.mxu1 %v3666_v42 }
 0x4ab   : > { %3256 = vmatmul.mubr.bf16.gmra.mrb[20].mxu1 %v1884_v40 }
 0x4ac   : > { %2415 = vmatpush1.bf16.msra.mxu1 %v3664_v49 }
 0x4ad   : > { %2416 = vmatprep.subr.bf16.mxu1 %v3669_v51 }
 0x4b0   : > { %2417 = vmatpush1.bf16.msra.mxu1 %v3667_v47 }
 0x4b1   : > { %2418 = vmatprep.subr.bf16.mxu1 %v3672_v53 }
 0x4b4   : > { %2419 = vmatpush1.bf16.msra.mxu1 %v3670_v54 }
 0x4b5   : > { %2420 = vmatprep.subr.bf16.mxu1 %v3675_v55 }
 0x4b8   : > { %2421 = vmatpush1.bf16.msra.mxu1 %v3673_v57 }
 0x4b9   : > { %2422 = vmatprep.subr.bf16.mxu1 %v3678_v61  ;;  %v3700_v61 = vld [vmem:[#allocation7 + $0x400] ss:$8 sps:$4 sm:$0xff]  }
 0x4bc   : > { %2423 = vmatpush1.bf16.msra.mxu1 %v3676_v62  ;;  %v3705_v62 = vld [vmem:[#allocation7 + $0x414] ss:$8 sps:$4 sm:$0xff]  }
 0x4bd   : > { %2424 = vmatprep.subr.bf16.mxu1 %v3681_v41 }
 0x4c0   : > { %2425 = vmatpush1.bf16.msra.mxu1 %v3679_v4  ;;  %v3703_v4 = vld [vmem:[#allocation7 + $0x410] ss:$8 sps:$4 sm:$0xff]  }
 0x4c1   : > { %2426 = vmatprep.subr.bf16.mxu1 %v3684_v8  ;;  %v1267_v8 = vadd.f32 %v4472_v10, %v4359_v18 }
 0x4c4   : > { %2427 = vmatpush1.bf16.msra.mxu1 %v3682_v9 }
 0x4c5   : > { %2428 = vmatprep.subr.bf16.mxu1 %v3687_v12 }
 0x4c8   : > { %2429 = vmatpush1.bf16.msra.mxu1 %v3685_v46  ;;  %v3708_v46 = vld [vmem:[#allocation7 + $0x424] ss:$8 sps:$4 sm:$0xff]  }
 0x4c9   : > { %2430 = vmatprep.subr.bf16.mxu1 %v3690_v13  ;;  %v1265_v13 = vadd.f32 %v4474_v36, %v4361_v21 }
 0x4cc   : > { %2431 = vmatpush1.bf16.msra.mxu1 %v3688_v48 }
 0x4cd   : > { %2432 = vmatprep.subr.bf16.mxu1 %v3693_v14 }
 0x4d0   : > { %2433 = vmatpush1.bf16.msra.mxu1 %v3691_v15  ;;  %v1268_v15 = vadd.f32 %v4476_v5, %v4373_v33  ;;  %v3711_v33 = vld [vmem:[#allocation7 + $0x434] ss:$8 sps:$4 sm:$0xff]  }
 0x4d1   : > { %2434 = vmatprep.subr.bf16.mxu1 %v3696_v58 }
 0x4d4   : > { %2435 = vmatpush1.bf16.msra.mxu1 %v3694_v16 }
 0x4d5   : > { %2436 = vmatprep.subr.bf16.mxu1 %v3699_v17 }
 0x4d8   : > { %2437 = vmatpush1.bf16.msra.mxu1 %v3697_v19  ;;  %v1266_v19 = vadd.f32 %v4479_v37, %v4368_v29 }
 0x4d9   : > { %2479 = vmatprep.subr.bf16.mxu1 %v3702_v11 }
 0x56e   : > { %v3253_v20 = vpop.f32.mrb[16].mxu1 }
 0x56f   : > { %v2001_v24 = vadd.f32 %v3253_v20, %v3049_v2  ;;  %v1992_v26 = vpop.f32.mrb[17].mxu1  ;;  %v3706_v20 = vld [vmem:[#allocation7 + $0x420] ss:$8 sps:$4 sm:$0xff]  }
 0x570   : > { %v1993_v52 = vadd.f32 %v3049_v2, %v1992_v26  ;;  %v3254_v50 = vpop.f32.mrb[18].mxu1 }
 0x571   : > { %v4534_v30 = vadd.f32 %v2001_v24, %v1263_v22  ;;  %v2004_v59 = vadd.f32 %v3254_v50, %v3049_v2  ;;  %v1995_v63 = vpop.f32.mrb[19].mxu1  ;;  %v2042_v28 = vrot.slane %v2001_v24, 4 }
 0x572   : > { %v4538_v34 = vadd.f32 %v1993_v52, %v1261_v45  ;;  %v2039_v0 = vrot.slane %v1993_v52, 4  ;;  %v1996_v25 = vadd.f32 %v3049_v2, %v1995_v63  ;;  %v3709_v63 = vld [vmem:[#allocation7 + $0x430] ss:$8 sps:$4 sm:$0xff]  }
 0x573   : > { %v4540_v23 = vadd.f32 %v2004_v59, %v1264_v56  ;;  %v2044_v1 = vrot.slane %v2004_v59, 4 }
 0x574   : > { %v2063_v27 = vsel %vm1331_vm7, 0.0, %v2039_v0  ;;  %v4543_v39 = vadd.f32 %v1996_v25, %v1262_v7  ;;  %v2040_v3 = vrot.slane %v1996_v25, 4 }
 0x575   : > { %v4546_v31 = vsel %vm1331_vm7, %v2042_v28, %v2044_v1  ;;  %v2067_v42 = vrot.slane %v2063_v27, 4 }
 0x576   : > { %v2072_v43 = vrot.slane %v4546_v31, 4  ;;  %v4550_v6 = vsel %vm1331_vm7, %v2039_v0, %v2040_v3  ;;  %v4553_v38 = vsel %vm1331_vm7, %v2040_v3, %v2042_v28  ;;  %v3714_v28 = vld [vmem:[#allocation7 + $0x444] ss:$8 sps:$4 sm:$0xff]  }
 0x577   : > { %v2068_v44 = vrot.slane %v4550_v6, 4  ;;  %v2070_v49 = vrot.slane %v4553_v38, 4  ;;  %v2094_v40 = vpack.c.bf16 %v4553_v38, %v4550_v6  ;;  %v3109_v51 = vpack.c.bf16 %v4550_v6, %v2039_v0  ;;  %v3726_v6 = vld [vmem:[#allocation8 + $0x90] sm:$0xff]  }
 0x578   : > { %v2095_v47 = vpack.c.bf16 %v4546_v31, %v4553_v38  ;;  %v3728_v38 = vld [vmem:[#allocation8 + $0xa0] sm:$0xff]  }
 0x579   : > { %v2069_v53 = vsel %vm1331_vm7, %v2067_v42, %v2068_v44  ;;  %v2071_v54 = vsel %vm1331_vm7, %v2068_v44, %v2070_v49  ;;  %v2073_v55 = vsel %vm1331_vm7, %v2070_v49, %v2072_v43 }
 0x57a   : > { %v2093_v57 = vpack.c.bf16 %v2071_v54, %v2069_v53  ;;  %v3712_v54 = vld [vmem:[#allocation7 + $0x440] ss:$8 sps:$4 sm:$0xff]  }
 0x57c   : > { %2438 = vmatprep.mubr.bf16.mxu1 %v2093_v57 }
 0x57d   : > { %3110 = vmatmul.mubr.msk.bf16.vlgmr.msra.gmra.mrb[24].mxu1 %vm3108_vm11, %v3109_v51 }
 0x57e   : > { %v3257_v41 = vpop.f32.mrb[20].mxu1  ;;  %2480 = vmatpush1.bf16.msra.mxu1 %v3700_v61  ;;  %v3717_v61 = vld [vmem:[#allocation7 + $0x454] ss:$8 sps:$4 sm:$0xff]  }
 0x57f   : > { %v2017_v9 = vadd.f32 %v3257_v41, %v3049_v2  ;;  %v2008_v12 = vpop.f32.mrb[21].mxu1  ;;  %2481 = vmatprep.subr.bf16.mxu1 %v3705_v62  ;;  %v3715_v62 = vld [vmem:[#allocation7 + $0x450] ss:$8 sps:$4 sm:$0xff]   ;;  %v3720_v41 = vld [vmem:[#allocation7 + $0x464] ss:$8 sps:$4 sm:$0xff]  }
 0x580   : > { %v2009_v48 = vadd.f32 %v3049_v2, %v2008_v12  ;;  %v3258_v14 = vpop.f32.mrb[22].mxu1  ;;  %v3730_v12 = vld [vmem:[#allocation8 + $0xb0] sm:$0xff]  }
 0x581   : > { %v4573_v58 = vadd.f32 %v2017_v9, %v1267_v8  ;;  %v2020_v16 = vadd.f32 %v3258_v14, %v3049_v2  ;;  %v2011_v17 = vpop.f32.mrb[23].mxu1  ;;  %v2050_v22 = vrot.slane %v2017_v9, 4  ;;  %v3723_v8 = vld [vmem:[#allocation7 + $0x474] ss:$8 sps:$4 sm:$0xff]   ;;  %v3721_v9 = vld [vmem:[#allocation7 + $0x470] ss:$8 sps:$4 sm:$0xff]  }
 0x582   : > { %v4577_v18 = vadd.f32 %v2009_v48, %v1265_v13  ;;  %v2046_v10 = vrot.slane %v2009_v48, 4  ;;  %v2012_v11 = vadd.f32 %v3049_v2, %v2011_v17  ;;  %2482 = vmatpush1.bf16.msra.mxu1 %v3703_v4  ;;  %v3718_v4 = vld [vmem:[#allocation7 + $0x460] ss:$8 sps:$4 sm:$0xff]   ;;  %v3058_v13 = vld [vmem:[%s4692_s4 + $0x4] sm:$0x3] }
 0x583   : > { %v4579_v21 = vadd.f32 %v2020_v16, %v1268_v15  ;;  %v4581_v36 = vrot.slane %v2020_v16, 4  ;;  %2483 = vmatprep.subr.bf16.mxu1 %v3708_v46  ;;  %v3731_v46 = vld [vmem:[#allocation8 + $0xb8] sm:$0xff]   ;;  %v2163_v48 = vrot.slane %v3058_v13, %v4403_v35 }
 0x584   : > { %v2047_v5 = vsel %vm1331_vm7, %v2044_v1, %v2046_v10  ;;  %v4584_v24 = vadd.f32 %v2012_v11, %v1266_v19  ;;  %v2048_v26 = vrot.slane %v2012_v11, 4 }
 0x585   : > { %v2074_v45 = vrot.slane %v2047_v5, 4  ;;  %v2053_v29 = vsel %vm1331_vm7, %v2050_v22, %v4581_v36  ;;  %v2064_v37 = vsel %vm1331_vm7, %v4581_v36, 0.0  ;;  %v2097_v2 = vpack.c.bf16 %v2047_v5, %v4546_v31  ;;  %v3724_v31 = vld [vmem:[#allocation8 + $0x80] sm:$0xff]  }
 0x586   : > { %v2080_v52 = vrot.slane %v2053_v29, 4  ;;  %v2082_v50 = vrot.slane %v2064_v37, 4  ;;  %v3112_v56 = vpack.c.bf16 %v4581_v36, %v2053_v29  ;;  %v2049_v59 = vsel %vm1331_vm7, %v2046_v10, %v2048_v26  ;;  %2484 = vmatpush1.bf16.msra.mxu1 %v3706_v20  ;;  %3259 = vmatprep.subr.bf16.mxu0 %v3724_v31 }
 0x587   : > { %v2051_v7 = vsel %vm1331_vm7, %v2048_v26, %v2050_v22  ;;  %v2076_v0 = vrot.slane %v2049_v59, 4  ;;  %v2075_v25 = vsel %vm1331_vm7, %v2072_v43, %v2074_v45  ;;  %2485 = vmatprep.subr.bf16.mxu1 %v3711_v33  ;;  %v2098_v1 = vpack.c.bf16 %v2049_v59, %v2047_v5  ;;  %3260 = vmatpush3.bf16.msra.mxu0 %v3724_v31 }
 0x588   : > { %v2078_v27 = vrot.slane %v2051_v7, 4  ;;  %v2096_v3 = vpack.c.bf16 %v2075_v25, %v2073_v55  ;;  %v2083_v42 = vsel %vm1331_vm7, %v2080_v52, %v2082_v50  ;;  %v2101_v44 = vpack.c.bf16 %v2053_v29, %v2051_v7 }
 0x589   : > { %v2077_v49 = vsel %vm1331_vm7, %v2074_v45, %v2076_v0  ;;  %v2100_v51 = vpack.c.bf16 %v2051_v7, %v2049_v59  ;;  %v4616_v33 = vrot.slane %v3058_v13, %v4398_v32 }
 0x58a   : > { %2448 = vmatprep.mubr.bf16.mxu1 %v2096_v3  ;;  %v2079_v53 = vsel %vm1331_vm7, %v2076_v0, %v2078_v27  ;;  %2486 = vmatpush1.bf16.msra.mxu1 %v3709_v63  ;;  %v2081_v57 = vsel %vm1331_vm7, %v2078_v27, %v2080_v52 }
 0x58b   : > { %2449 = vmatmul.mubr.bf16.gmra.mrb[28].mxu1 %v2095_v47  ;;  %v2099_v43 = vpack.c.bf16 %v2079_v53, %v2077_v49  ;;  %2487 = vmatprep.subr.bf16.mxu1 %v3714_v28  ;;  %v2102_v55 = vpack.c.bf16 %v2083_v42, %v2081_v57  ;;  %v3725_v47 = vld [vmem:[#allocation8 + $0x88] sm:$0xff]  }
 0x58c   : > { %3261 = vmatprep.subr.bf16.mxu0 %v3725_v47 }
 0x58d   : > { %2458 = vmatprep.mubr.bf16.mxu1 %v2099_v43  ;;  %3262 = vmatpush3.bf16.msra.mxu0 %v3725_v47 }
 0x58e   : > { %2488 = vmatpush1.bf16.msra.mxu1 %v3712_v54  ;;  %3263 = vmatprep.subr.bf16.mxu0 %v3726_v6 }
 0x58f   : > { %2489 = vmatprep.subr.bf16.mxu1 %v3717_v61 }
 0x591   : > { %3264 = vmatpush3.bf16.msra.mxu0 %v3726_v6 }
 0x592   : > { %2490 = vmatpush1.bf16.msra.mxu1 %v3715_v62 }
 0x593   : > { %2459 = vmatmul.mubr.bf16.gmra.mrb[32].mxu1 %v2098_v1  ;;  %2491 = vmatprep.subr.bf16.mxu1 %v3720_v41 }
 0x594   : > { %2468 = vmatprep.mubr.bf16.mxu1 %v2102_v55 }
 0x596   : > { %2492 = vmatpush1.bf16.msra.mxu1 %v3718_v4 }
 0x597   : > { %2493 = vmatprep.subr.bf16.mxu1 %v3723_v8 }
 0x59a   : > { %2494 = vmatpush1.bf16.msra.mxu1 %v3721_v9 }
 0x59b   : > { %2469 = vmatmul.mubr.bf16.gmra.mrb[36].mxu1 %v2101_v44  ;;  %3283 = vmatprep.subr.bf16.mxu1 %v3724_v31 }
 0x59c   : > { %2511 = vmatprep.mubr.bf16.mxu1 %v4074_v60 }
 0x5a3   : > { %2512 = vmatmul.mubr.bf16.vlgmr.msra.gmra.mrb[24].mxu1 %v2094_v40  ;;  %v3729_v40 = vld [vmem:[#allocation8 + $0xa8] sm:$0xff]  }
 0x5a4   : > { %2521 = vmatprep.mubr.bf16.mxu1 %v4074_v60  ;;  %3291 = vmatpush3.bf16.msra.mxu1 %v3724_v31 }
 0x5a5   : > { %3284 = vmatprep.subr.bf16.mxu1 %v3725_v47 }
 0x5a8   : > { %3292 = vmatpush3.bf16.msra.mxu1 %v3725_v47 }
 0x5a9   : > { %3285 = vmatprep.subr.bf16.mxu1 %v3726_v6 }
 0x5ab   : > { %2522 = vmatmul.mubr.bf16.gmra.mrb[28].mxu1 %v2097_v2 }
 0x5ac   : > { %2531 = vmatprep.mubr.bf16.mxu1 %v4074_v60  ;;  %3293 = vmatpush3.bf16.msra.mxu1 %v3726_v6 }
 0x5b3   : > { %2532 = vmatmul.mubr.bf16.gmra.mrb[32].mxu1 %v2100_v51 }
 0x5b4   : > { %2541 = vmatprep.mubr.bf16.mxu1 %v4074_v60  ;;  %v3727_v60 = vld [vmem:[#allocation8 + $0x98] sm:$0xff]  }
 0x5b5   : > { %3265 = vmatprep.subr.bf16.mxu0 %v3727_v60  ;;  %3286 = vmatprep.subr.bf16.mxu1 %v3727_v60 }
 0x5b6   : > { %3266 = vmatpush3.bf16.msra.mxu0 %v3727_v60  ;;  %3294 = vmatpush3.bf16.msra.mxu1 %v3727_v60 }
 0x5b7   : > { %3267 = vmatprep.subr.bf16.mxu0 %v3728_v38  ;;  %3287 = vmatprep.subr.bf16.mxu1 %v3728_v38 }
 0x5ba   : > { %3268 = vmatpush3.bf16.msra.mxu0 %v3728_v38  ;;  %3295 = vmatpush3.bf16.msra.mxu1 %v3728_v38 }
 0x5bb   : > { %3113 = vmatmul.mubr.msk.bf16.gmra.mrb[36].mxu1 %vm3111_vm12, %v3112_v56  ;;  %3269 = vmatprep.subr.bf16.mxu0 %v3729_v40 }
 0x5bc   : > { %3288 = vmatprep.subr.bf16.mxu1 %v3729_v40 }
 0x5be   : > { %3270 = vmatpush3.bf16.msra.mxu0 %v3729_v40  ;;  %3296 = vmatpush3.bf16.msra.mxu1 %v3729_v40 }
 0x5bf   : > { %3271 = vmatprep.subr.bf16.mxu0 %v3730_v12  ;;  %3289 = vmatprep.subr.bf16.mxu1 %v3730_v12 }
 0x5c2   : > { %3272 = vmatpush3.bf16.msra.mxu0 %v3730_v12  ;;  %3297 = vmatpush3.bf16.msra.mxu1 %v3730_v12 }
 0x5c3   : > { %3273 = vmatprep.subr.bf16.mxu0 %v3731_v46  ;;  %3290 = vmatprep.subr.bf16.mxu1 %v3731_v46 }
 0x5c6   : > { %3274 = vmatpush3.bf16.msra.mxu0 %v3731_v46  ;;  %3298 = vmatpush3.bf16.msra.mxu1 %v3731_v46 }
 0x676   : > { %v2513_v14 = vpop.f32.mrb[24].mxu1 }
 0x677   : > { %v2515_v15 = vpop.f32.mrb[25].mxu1  ;;  %v3347_v37 = vadd.f32 %v2513_v14, %v4616_v33 }
 0x678   : > { %v3348_v16 = vadd.f32 %v2515_v15, %v2163_v48  ;;  %v2517_v17 = vpop.f32.mrb[26].mxu1 }
 0x679   : > { %v2519_v19 = vpop.f32.mrb[27].mxu1  ;;  %v3349_v50 = vadd.f32 %v2517_v17, %v4616_v33 }
 0x67a   : > { %v3114_v10 = vmul.f32 -1.442695, %v3348_v16  ;;  %v3350_v11 = vadd.f32 %v2519_v19, %v2163_v48 }
 0x67c   : > { %3828 = vpow2.f32 %v3114_v10  ;;  %v3115_v20 = vmul.f32 -1.442695, %v3350_v11 }
 0x67e   : > { %3830 = vpow2.f32 %v3115_v20  ;;  %v2523_v22 = vpop.f32.mrb[28].mxu1 }
 0x67f   : > { %v2525_v36 = vpop.f32.mrb[29].mxu1  ;;  %v3351_v3 = vadd.f32 %v2523_v22, %v4616_v33 }
 0x680   : > { %v3352_v5 = vadd.f32 %v2525_v36, %v2163_v48  ;;  %v2527_v26 = vpop.f32.mrb[30].mxu1 }
 0x681   : > { %v2529_v45 = vpop.f32.mrb[31].mxu1  ;;  %v3353_v49 = vadd.f32 %v2527_v26, %v4616_v33 }
 0x682   : > { %v3116_v29 = vmul.f32 -1.442695, %v3352_v5  ;;  %v3354_v35 = vadd.f32 %v2529_v45, %v2163_v48 }
 0x684   : > { %3832 = vpow2.f32 %v3116_v29  ;;  %v3117_v2 = vmul.f32 -1.442695, %v3354_v35 }
 0x686   : > { %v3829_v52 = vpop.eup %3828  ;;  %3834 = vpow2.f32 %v3117_v2  ;;  %v2533_v56 = vpop.f32.mrb[32].mxu1 }
 0x687   : > { %v2584_v59 = vadd.f32 1.0, %v3829_v52  ;;  %v2535_v63 = vpop.f32.mrb[33].mxu1  ;;  %3836 = vtanh.f32 %v3347_v37  ;;  %v3355_v47 = vadd.f32 %v2533_v56, %v4616_v33 }
 0x688   : > { %v3831_v7 = vpop.eup %3830  ;;  %v3356_v32 = vadd.f32 %v2535_v63, %v2163_v48  ;;  %v2537_v0 = vpop.f32.mrb[34].mxu1 }
 0x689   : > { %3838 = vrcp.f32 %v2584_v59  ;;  %v2585_v25 = vadd.f32 1.0, %v3831_v7  ;;  %v2539_v28 = vpop.f32.mrb[35].mxu1  ;;  %v3357_v12 = vadd.f32 %v2537_v0, %v4616_v33 }
 0x68a   : > { %3840 = vtanh.f32 %v3349_v50  ;;  %v3118_v1 = vmul.f32 -1.442695, %v3356_v32  ;;  %v3358_v27 = vadd.f32 %v2539_v28, %v2163_v48 }
 0x68b   : > { %3842 = vrcp.f32 %v2585_v25 }
 0x68c   : > { %3844 = vpow2.f32 %v3118_v1  ;;  %v3119_v42 = vmul.f32 -1.442695, %v3358_v27  ;;  %v3123_v27 = vld [vmem:[%s4694_s6 + $0x2] ss:$0 sm:$0xff] }
 0x68e   : > { %v3833_v44 = vpop.eup %3832  ;;  %3846 = vpow2.f32 %v3119_v42  ;;  %v2543_v51 = vpop.f32.mrb[36].mxu1 }
 0x68f   : > { %v2586_v53 = vadd.f32 1.0, %v3833_v44  ;;  %v2545_v54 = vpop.f32.mrb[37].mxu1  ;;  %3848 = vtanh.f32 %v3351_v3  ;;  %v3359_v10 = vadd.f32 %v2543_v51, %v4616_v33 }
 0x690   : > { %v3835_v57 = vpop.eup %3834  ;;  %v3360_v43 = vadd.f32 %v2545_v54, %v2163_v48  ;;  %v2547_v55 = vpop.f32.mrb[38].mxu1 }
 0x691   : > { %3850 = vrcp.f32 %v2586_v53  ;;  %v2587_v61 = vadd.f32 1.0, %v3835_v57  ;;  %v2549_v62 = vpop.f32.mrb[39].mxu1  ;;  %v3837_v41 = vpop.eup %3836  ;;  %v3361_v36 = vadd.f32 %v2547_v55, %v4616_v33 }
 0x692   : > { %3852 = vtanh.f32 %v3353_v49  ;;  %v3120_v4 = vmul.f32 -1.442695, %v3360_v43  ;;  %v3362_v8 = vadd.f32 %v2549_v62, %v2163_v48 }
 0x693   : > { %v3839_v9 = vpop.eup %3838  ;;  %3854 = vrcp.f32 %v2587_v61 }
 0x694   : > { %v3841_v31 = vpop.eup %3840  ;;  %3856 = vpow2.f32 %v3120_v4  ;;  %v3121_v6 = vmul.f32 -1.442695, %v3362_v8  ;;  %v2608_v60 = vmul.f32 %v3839_v9, %v3837_v41 }
 0x695   : > { %v3843_v38 = vpop.eup %3842 }
 0x696   : > { %v3845_v40 = vpop.eup %3844  ;;  %3858 = vpow2.f32 %v3121_v6  ;;  %v2609_v46 = vmul.f32 %v3843_v38, %v3841_v31 }
 0x697   : > { %v2588_v13 = vadd.f32 1.0, %v3845_v40  ;;  %3860 = vtanh.f32 %v3355_v47 }
 0x698   : > { %v3847_v14 = vpop.eup %3846  ;;  %v2616_v15 = vpack.c.bf16 %v2609_v46, %v2608_v60 }
 0x699   : > { %3862 = vrcp.f32 %v2588_v13  ;;  %v2589_v48 = vadd.f32 1.0, %v3847_v14  ;;  %v3849_v16 = vpop.eup %3848 }
 0x69a   : > { %3864 = vtanh.f32 %v3357_v12  ;;  %3275 = vmatprep.mubr.bf16.mxu0 %v2616_v15 }
 0x69b   : > { %v3851_v17 = vpop.eup %3850  ;;  %3866 = vrcp.f32 %v2589_v48 }
 0x69c   : > { %v3853_v19 = vpop.eup %3852  ;;  %v2610_v11 = vmul.f32 %v3851_v17, %v3849_v16  ;;  %3868 = vtanh.f32 %v3359_v10 }
 0x69d   : > { %v3855_v20 = vpop.eup %3854 }
 0x69e   : > { %v3857_v22 = vpop.eup %3856  ;;  %v2611_v5 = vmul.f32 %v3855_v20, %v3853_v19 }
 0x69f   : > { %v2590_v26 = vadd.f32 1.0, %v3857_v22 }
 0x6a0   : > { %v3859_v45 = vpop.eup %3858  ;;  %v2617_v29 = vpack.c.bf16 %v2611_v5, %v2610_v11 }
 0x6a1   : > { %3870 = vrcp.f32 %v2590_v26  ;;  %v2591_v35 = vadd.f32 1.0, %v3859_v45  ;;  %v3861_v37 = vpop.eup %3860 }
 0x6a2   : > { %3872 = vtanh.f32 %v3361_v36  ;;  %3276 = vmatmul.mubr.bf16.vlgmr.msra.gmra.mrb[48].mxu0 %v2617_v29 }
 0x6a3   : > { %v3863_v2 = vpop.eup %3862  ;;  %3874 = vrcp.f32 %v2591_v35 }
 0x6a4   : > { %v3865_v52 = vpop.eup %3864  ;;  %v2612_v50 = vmul.f32 %v3863_v2, %v3861_v37 }
 0x6a5   : > { %v3867_v56 = vpop.eup %3866 }
 0x6a6   : > { %v2613_v59 = vmul.f32 %v3867_v56, %v3865_v52  ;;  %v3869_v7 = vpop.eup %3868 }
 0x6a8   : > { %v2618_v63 = vpack.c.bf16 %v2613_v59, %v2612_v50 }
 0x6aa   : > { %3279 = vmatprep.mubr.bf16.mxu1 %v2618_v63 }
 0x6ab   : > { %v3871_v33 = vpop.eup %3870 }
 0x6ac   : > { %v3873_v32 = vpop.eup %3872  ;;  %v2614_v0 = vmul.f32 %v3871_v33, %v3869_v7 }
 0x6ad   : > { %v3875_v25 = vpop.eup %3874 }
 0x6ae   : > { %v2615_v28 = vmul.f32 %v3875_v25, %v3873_v32 }
 0x6b0   : > { %v2619_v1 = vpack.c.bf16 %v2615_v28, %v2614_v0 }
 0x6b2   : > { %3280 = vmatmul.mubr.bf16.vlgmr.msra.gmra.mrb[40].mxu1 %v2619_v1 }
 0x775   : > { %v3277_v3 = vpop.f32.mrb[48].mxu0 }
 0x776   : > { %v2736_v42 = vadd.f32 %v3277_v3, %v3123_v27  ;;  %v2727_v44 = vpop.f32.mrb[49].mxu0 }
 0x777   : > { %v2728_v49 = vadd.f32 %v3123_v27, %v2727_v44  ;;  %v3278_v51 = vpop.f32.mrb[50].mxu0 }
 0x778   : > { %v2760_v53 = vadd.f32 %v2736_v42, %v4534_v30  ;;  %v2739_v54 = vadd.f32 %v3278_v51, %v3123_v27  ;;  %v2730_v57 = vpop.f32.mrb[51].mxu0 }
 0x779   : > { %v2758_v43 = vadd.f32 %v2728_v49, %v4538_v34  ;;  %v2731_v55 = vadd.f32 %v3123_v27, %v2730_v57 }
 0x77a   : > { %2768 = vst [vmem:[%s340_s30 + $0x10] sm:$0xff] %v2760_v53  ;;  %v2761_v61 = vadd.f32 %v2739_v54, %v4540_v23 }
 0x77b   : > { %2766 = vst [vmem:[%s340_s30] sm:$0xff] %v2758_v43  ;;  %v2759_v62 = vadd.f32 %v2731_v55, %v4543_v39 }
 0x77c   : > { %2769 = vst [vmem:[%s340_s30 + $0x18] sm:$0xff] %v2761_v61 }
 0x77d   : > { %2767 = vst [vmem:[%s340_s30 + $0x8] sm:$0xff] %v2759_v62 }
 0x785   : > { %v3281_v41 = vpop.f32.mrb[40].mxu1 }
 0x786   : > { %v2752_v4 = vadd.f32 %v3281_v41, %v3123_v27  ;;  %v2743_v8 = vpop.f32.mrb[41].mxu1 }
 0x787   : > { %v2744_v30 = vadd.f32 %v3123_v27, %v2743_v8  ;;  %v3282_v9 = vpop.f32.mrb[42].mxu1 }
 0x788   : > { %v2764_v34 = vadd.f32 %v2752_v4, %v4573_v58  ;;  %v2755_v31 = vadd.f32 %v3282_v9, %v3123_v27  ;;  %v2746_v47 = vpop.f32.mrb[43].mxu1 }
 0x789   : > { %v2762_v23 = vadd.f32 %v2744_v30, %v4577_v18  ;;  %v2747_v39 = vadd.f32 %v3123_v27, %v2746_v47 }
 0x78a   : > { %2772 = vst [vmem:[%s340_s30 + $0x30] sm:$0xff] %v2764_v34  ;;  %v2765_v6 = vadd.f32 %v2755_v31, %v4579_v21 }
 0x78b   : > { %2770 = vst [vmem:[%s340_s30 + $0x20] sm:$0xff] %v2762_v23  ;;  %v2763_v58 = vadd.f32 %v2747_v39, %v4584_v24 }
 0x78c   : > { %2773 = vst [vmem:[%s340_s30 + $0x38] sm:$0xff] %v2765_v6 }
 0x78d   : > { %2771 = vst [vmem:[%s340_s30 + $0x28] sm:$0xff] %v2763_v58 }
 0x78e   : > { %4003 = shalt.err (!%p4000_p4)
}
 0x78f   : > { %s4004_s12 = scalar_lea.hbm %s4643_s28, 1024  ;;  %s4008_s22 = scalar_lea.hbm %s4695_s7, 2048 }
 0x790   : > { %p4005_p9 = scmp.ne.s32.totalorder %s4643_s28, %s4004_s12  ;;  %p4009_p8 = scmp.lt.u32.totalorder %s4643_s28, %s4695_s7 }
 0x791   : > { %p4010_p13 = scmp.lt.u32.totalorder %s4008_s22, %s4004_s12  ;;  %p4012_p10 = scmp.lt.u32.totalorder %s4004_s12, %s4643_s28 }
 0x792   : > { %p4006_p0 = pnand %p4005_p9, %p4267_p5 }
 0x793   : > { %p4011_p6 = por %p4010_p13, %p4009_p8 }
 0x794   : > { %p4007_p11 = pneg %p4006_p0 }
 0x795   : > { %p4013_p3 = por %p4012_p10, %p4011_p6 }
 0x797   : > { %p4014_p7 = pnand %p4013_p3, %p4007_p11 }
 0x799   : > { %4017 = shalt.err (!%p4014_p7)
}
 0x79a   : > { %s4077_s29 = smov 128   ;;  %s4078_s10 = smov 8  }
 0x79b   : > { %3409 = dma.vmem_to_hbm [thread:$0]  (%p4267_p5), %s4636_s9, 1024, %s4643_s28, %s2775_s14, %s4077_s29, %s4077_s29, %s4078_s10  }
 0x79c PF: > { %s4723_s19 = sld [smem:[#allocation15_spill]]  ;;  %s2803_s1 = sand.u32 1, %s4052_s24  }
 0x79d   : > { %p4725_p1 = scmp.ge.s32.totalorder %s4064_s27, 2  ;;  %s2804_s8 = scalar_lea.sflag [#allocation4], %s2803_s1 }
 0x7a2   : > { %p4724_p12 = scmp.ne.s32.totalorder %s4723_s19, 0 }
 0x7a4   : > { %p3426_p2 = pnand %p4725_p1, %p4724_p12 }
 0x7a6   : > { %4047 = dma.done.wait (!%p3426_p2), %s2804_s8, 1024  }
 0x7a7   : > { %4049 = vsyncadd (!%p3426_p2), %s2804_s8, 4294966272  ;;  %p22_p4 = scmp.ge.s32.totalorder %s4232_s21, 4   ;;  %s4726_s24 = smov %s4056_s25 }
 0x7a8   : > { %s4727_s25 = smov %s4060_s26  ;;  %s4728_s26 = smov %s4263_s13 }
 0x7a9   : > { %s4729_s27 = smov %s4232_s21  ;;  %24 = sbr.rel (!%p22_p4) target bundleno = 9 (0x9), region = 113 }
 0x7b0   :  { %2809 = vsyncpa [#allocation3], 1 }
 0x7b1   :  { %2811 = vsyncpa [#allocation3 + $0x1], 1 }
 0x7b2   :  { %2812 = vsyncpa [#allocation6], 1 }
 0x7b3   :  { %2813 = vsyncpa [#allocation9], 1 }
 0x7b4   :  { %2814 = vsyncpa [#allocation4], 1 }
 0x7b5   :  { %2816 = vsyncpa [#allocation4 + $0x1], 1 }

</bundles_post_ra>
